<compile_context>
chip_gen: v7x
topology: tpu7x:2x2x1
jax: 0.10.0
libtpu: 0.0.40
codegen_flags: <defaults>
</compile_context>

<pallas_src>
import math

import jax
import jax.numpy as jnp
from jax import lax
from jax.experimental import pallas as pl
from jax.experimental.pallas import tpu as pltpu


def _cdiv(a, b):
    return -(-a // b)


def _round_up(a, b):
    return _cdiv(a, b) * b


_LANES = 512                  # lane-dense last dim (multiple of 128)
_MAX_FOCAL_ROWS = 512         # ~1 MiB per input block (safe for v7x 32 MiB scoped VMEM)
_MAX_REG_ROWS = 256           # pred block = C*br*512*4 B -> ~2 MiB at C=4
_VMEM_LIMIT = 32 * 1024 * 1024
_PAD_LOGIT = -1e9             # sigmoid(-1e9) == 0 -> neutral
_LOG_LO = math.log(1e-4)      # == log(clip lower bound)
_LOG_HI = math.log(1.0 - 1e-4)


# ----------------------------- Pallas kernels ------------------------------

def _make_focal_kernel(s_per, br, valid_rows, need_mask):
    """Fused CornerNet focal loss + weighted MSE partial sums for one level."""

    def kernel(pred_ref, tar_ref, invmax_ref,
               pos_out, neg_out, npos_out, mse_out,
               acc_pos, acc_neg, acc_npos, acc_mse):
        i = pl.program_id(1)

        @pl.when(i == 0)
        def _init():
            acc_pos[...] = jnp.zeros_like(acc_pos)
            acc_neg[...] = jnp.zeros_like(acc_neg)
            acc_npos[...] = jnp.zeros_like(acc_npos)
            acc_mse[...] = jnp.zeros_like(acc_mse)

        logits = pred_ref[...].astype(jnp.float32)            # (br, LANES)
        tar = tar_ref[...].astype(jnp.float32)                # (br, LANES)

        if need_mask:
            # Static compile-time gate: only emitted when the grid overhangs the
            # true row count. Garbage (possibly NaN) rows are forced to neutral
            # values, so they contribute exactly 0 to every partial sum.
            row0 = (pl.program_id(0) * s_per + i) * br
            rid = lax.broadcasted_iota(jnp.int32, (br, _LANES), 0) + row0
            valid = rid < valid_rows
            logits = jnp.where(valid, logits, _PAD_LOGIT)
            tar = jnp.where(valid, tar, 0.0)

        p = jax.nn.sigmoid(logits)
        # One EUP log per element; log(1-p) = log(p) - logits, clipped in the
        # log domain to preserve the reference clip(·, 1e-4, 1-1e-4) behavior.
        lp = jnp.log(p)
        pos_log = jnp.clip(lp, _LOG_LO, _LOG_HI)
        neg_log = jnp.clip(lp - logits, _LOG_LO, _LOG_HI)

        pos_inds = (tar >= 0.9).astype(jnp.float32)
        neg_inds = 1.0 - pos_inds
        one_m_p = 1.0 - p
        neg_w = (1.0 - tar) * (1.0 - tar)                      # weight = 2
        pos_l = pos_log * (one_m_p * one_m_p) * pos_inds       # *100 folded into glue
        neg_l = neg_log * (p * p) * neg_w * neg_inds

        # weighted MSE on the nonzero-max-normalized target (tar*inv_max is
        # exact for tar == 0, so no select needed here)
        t_n = tar * invmax_ref[...]
        w = jnp.where(t_n > 0.0, 1.0 + 1000.0 * t_n, 1.0)
        d = t_n - p
        mse = w * d * d

        # Per-lane accumulation (VPU); cross-lane reduce deferred to last step.
        acc_pos[...] += jnp.sum(pos_l, axis=0, keepdims=True)
        acc_neg[...] += jnp.sum(neg_l, axis=0, keepdims=True)
        acc_npos[...] += jnp.sum(pos_inds, axis=0, keepdims=True)
        acc_mse[...] += jnp.sum(mse, axis=0, keepdims=True)

        @pl.when(i == pl.num_programs(1) - 1)
        def _finalize():
            pos_out[...] = jnp.zeros_like(pos_out) + jnp.sum(acc_pos[...])
            neg_out[...] = jnp.zeros_like(neg_out) + jnp.sum(acc_neg[...])
            npos_out[...] = jnp.zeros_like(npos_out) + jnp.sum(acc_npos[...])
            mse_out[...] = jnp.zeros_like(mse_out) + jnp.sum(acc_mse[...])

    return kernel


def _make_reg_kernel(s_per, br, valid_rows, need_mask, cw):
    """reg_l1_loss partial sums: sum(mask * |pred - tar|) and sum(mask).

    pred block: (1, C, br, 512) of output[0]; whd channels are 1:1+cw.
    whd  block: (1, cw, br, 512); mask is built in-kernel from whd channel 0.
    """

    def kernel(pred_ref, whd_ref, l1_out, m_out, acc_l1, acc_m):
        j = pl.program_id(2)

        @pl.when(j == 0)
        def _init():
            acc_l1[...] = jnp.zeros_like(acc_l1)
            acc_m[...] = jnp.zeros_like(acc_m)

        pred = pred_ref[...][0, 1:1 + cw].astype(jnp.float32)   # (cw, br, LANES)
        tar = whd_ref[...][0].astype(jnp.float32)               # (cw, br, LANES)

        if need_mask:
            row0 = (pl.program_id(0) * s_per + j) * br
            rid = lax.broadcasted_iota(jnp.int32, (br, _LANES), 0) + row0
            valid = (rid < valid_rows)[None]                    # (1, br, LANES)
            pred = jnp.where(valid, pred, 0.0)
            tar = jnp.where(valid, tar, 0.0)

        m = (tar[0:1] != 0.0).astype(jnp.float32)               # (1, br, LANES)
        contrib = jnp.sum(m * jnp.abs(pred - tar), axis=0)      # (br, LANES)

        acc_l1[...] += jnp.sum(contrib, axis=0, keepdims=True)
        acc_m[...] += jnp.sum(m[0], axis=0, keepdims=True)

        @pl.when(j == pl.num_programs(2) - 1)
        def _finalize():
            l1_out[...] = jnp.zeros_like(l1_out) + jnp.sum(acc_l1[...])
            m_out[...] = jnp.zeros_like(m_out) + jnp.sum(acc_m[...])

    return kernel


# ------------------------------ pallas_call glue ----------------------------

def _focal_mse_sums(pred_flat, tar_flat, inv_max, n_elem):
    """Returns (pos_loss_sum, neg_loss_sum, num_pos, mse_sum)."""
    rem = n_elem % _LANES
    if rem:
        # Rare fallback: the (rows, 512) reshape needs a 512-multiple; pad with
        # neutral values (at most 511 elements of padding).
        pad = _LANES - rem
        pred_flat = jnp.pad(pred_flat, (0, pad), constant_values=_PAD_LOGIT)
        tar_flat = jnp.pad(tar_flat, (0, pad))
    rows = pred_flat.size // _LANES
    pred2d = pred_flat.reshape(rows, _LANES)
    tar2d = tar_flat.reshape(rows, _LANES)

    br = min(_MAX_FOCAL_ROWS, _round_up(rows, 8))
    n_blocks = _cdiv(rows, br)
    par = 2 if n_blocks >= 2 else 1        # megacore split over row chunks
    steps_total = _round_up(n_blocks, par)
    s_per = steps_total // par
    need_mask = steps_total * br > rows    # partial / phantom trailing blocks

    kernel = _make_focal_kernel(s_per, br, rows, need_mask)

    def row_map(p, i):
        return (p * s_per + i, 0)

    s_out = jax.ShapeDtypeStruct((par, 1, 1), jnp.float32)
    pos, neg, npos, mse = pl.pallas_call(
        kernel,
        out_shape=(s_out,) * 4,
        grid_spec=pltpu.PrefetchScalarGridSpec(
            num_scalar_prefetch=0,
            grid=(par, s_per),
            in_specs=[
                pl.BlockSpec((br, _LANES), row_map),
                pl.BlockSpec((br, _LANES), row_map),
                pl.BlockSpec((1, 1), lambda p, i: (0, 0)),
            ],
            out_specs=(pl.BlockSpec((1, 1, 1), lambda p, i: (p, 0, 0)),) * 4,
            scratch_shapes=[pltpu.VMEM((1, _LANES), jnp.float32)] * 4,
        ),
        compiler_params=pltpu.CompilerParams(
            dimension_semantics=("parallel", "arbitrary"),
            vmem_limit_bytes=_VMEM_LIMIT,
        ),
    )(pred2d, tar2d, inv_max)
    return jnp.sum(pos), jnp.sum(neg), jnp.sum(npos), jnp.sum(mse)


def _reg_l1_sums(pred_bcn, whd_bcn):
    """Returns (sum mask*|pred - tar|, sum mask)."""
    B, C, N = pred_bcn.shape
    cw = whd_bcn.shape[1]

    rem = N % _LANES
    if rem:
        # Rare fallback: pad N to a 512 multiple with zeros (mask == 0 there).
        padn = _LANES - rem
        pred_bcn = jnp.pad(pred_bcn, ((0, 0), (0, 0), (0, padn)))
        whd_bcn = jnp.pad(whd_bcn, ((0, 0), (0, 0), (0, padn)))
    nr = pred_bcn.shape[2] // _LANES
    pred4 = pred_bcn.reshape(B, C, nr, _LANES)
    whd4 = whd_bcn.reshape(B, cw, nr, _LANES)

    br = min(_MAX_REG_ROWS, _round_up(nr, 8))
    n_blocks = _cdiv(nr, br)
    par = 2 if n_blocks >= 2 else 1
    steps_total = _round_up(n_blocks, par)
    s_per = steps_total // par
    need_mask = steps_total * br > nr

    kernel = _make_reg_kernel(s_per, br, nr, need_mask, cw)

    s_out = jax.ShapeDtypeStruct((par, B, 1, 1), jnp.float32)
    l1, msum = pl.pallas_call(
        kernel,
        out_shape=(s_out, s_out),
        grid_spec=pltpu.PrefetchScalarGridSpec(
            num_scalar_prefetch=0,
            grid=(par, B, s_per),
            in_specs=[
                pl.BlockSpec((1, C, br, _LANES),
                             lambda p, b, j: (b, 0, p * s_per + j, 0)),
                pl.BlockSpec((1, cw, br, _LANES),
                             lambda p, b, j: (b, 0, p * s_per + j, 0)),
            ],
            out_specs=(pl.BlockSpec((1, 1, 1, 1), lambda p, b, j: (p, b, 0, 0)),) * 2,
            scratch_shapes=[pltpu.VMEM((1, _LANES), jnp.float32)] * 2,
        ),
        compiler_params=pltpu.CompilerParams(
            dimension_semantics=("parallel", "parallel", "arbitrary"),
            vmem_limit_bytes=_VMEM_LIMIT,
        ),
    )(pred4, whd4)
    return jnp.sum(l1), jnp.sum(msum)


# ------------------------------ loss wrapper --------------------------------

def _focal_loss_mse_level(pred_b1hwd, tar_b1hwd):
    """focal_loss_mse(pred_logits, tar) for one deep-supervision level."""
    B = pred_b1hwd.shape[0]
    n_elem = tar_b1hwd.size

    # nonzero-max normalizer (map_nonzero_to_0_max) with one XLA reduce.
    neg_inf = jnp.float32(-jnp.inf)
    nz_max = jnp.max(jnp.where(tar_b1hwd != 0, tar_b1hwd.astype(jnp.float32), neg_inf))
    safe_max = jnp.where(jnp.isneginf(nz_max), jnp.float32(1.0), nz_max)
    inv_max = (1.0 / safe_max).astype(jnp.float32).reshape(1, 1)

    pos, neg, npos, mse = _focal_mse_sums(
        pred_b1hwd.reshape(-1), tar_b1hwd.reshape(-1), inv_max, n_elem)

    # final scalar combination in plain JAX (matches the PyTorch reference)
    pos = pos * 100.0                           # scale folded out of the kernel
    safe_npos = jnp.where(npos == 0.0, 1.0, npos)
    loss_focal = jnp.where(npos == 0.0, -neg, -(pos + neg) / safe_npos) / B
    loss_mse = mse / n_elem
    return 1e-4 * loss_focal + loss_mse


def deep_supervision_loss(output, target, whd_target, weight_factors):
    """Equivalent of DeepSupervisionWrapper.forward(output, target, whd_target)."""
    assert any(w != 0 for w in weight_factors), \
        'At least one weight factor should be != 0.0'

    loss_sum = jnp.float32(0.0)
    for w, out, tar in zip(weight_factors, output, target):
        if w == 0.0:
            continue
        loss_sum = loss_sum + w * _focal_loss_mse_level(out[:, 0:1], tar)

    # whd L1 path: native (B, C, H*W*D) layout (free reshape, no transpose,
    # no materialized channel slice / mask arrays).
    out0 = output[0]
    B, C = out0.shape[0], out0.shape[1]
    N = out0.shape[2] * out0.shape[3] * out0.shape[4]
    pred_bcn = out0.reshape(B, C, N)
    whd_bcn = whd_target.reshape(whd_target.shape[0], whd_target.shape[1], N)

    l1, msum = _reg_l1_sums(pred_bcn, whd_bcn)
    loss_f1 = l1 / (msum + 1e-4)
    return loss_sum * 100.0 + loss_f1


# ------------------------- pure-JAX reference (check) ------------------------

def _ref_loss(output, target, whd_target, weight_factors):
    def focal(preds, targets):
        pos_inds = (targets >= 0.9).astype(jnp.float32)
        neg_inds = (targets < 0.9).astype(jnp.float32)
        neg_w = (1 - targets) ** 2
        pos_l = jnp.log(jnp.clip(preds, 1e-4, 1 - 1e-4)) * (1 - preds) ** 2 * pos_inds * 100.0
        neg_l = jnp.log(jnp.clip(1 - preds, 1e-4, 1 - 1e-4)) * preds ** 2 * neg_w * neg_inds
        num_pos = pos_inds.sum()
        loss = jnp.where(num_pos == 0, -neg_l.sum(),
                         -(pos_l.sum() + neg_l.sum()) / jnp.where(num_pos == 0, 1.0, num_pos))
        return loss / preds.shape[0]

    def wmse(y_pred, y_true):
        nz = y_true != 0
        mx = jnp.max(jnp.where(nz, y_true, -jnp.inf))
        mx = jnp.where(jnp.isneginf(mx), 1.0, mx)
        y_n = jnp.where(nz, y_true / mx, y_true)
        w = jnp.where(y_n > 0, 1.0 + 1000.0 * y_n, 1.0)
        return jnp.mean(w * (y_n - y_pred) ** 2)

    def flm(pred, tar):
        p = jax.nn.sigmoid(pred)
        return 1e-4 * focal(p, tar) + wmse(p, tar)

    loss_sum = sum(w * flm(o[:, 0:1], t)
                   for w, o, t in zip(weight_factors, output, target) if w != 0.0)
    mask = (whd_target[:, 0] != 0).astype(jnp.float32)[:, None]
    pred = output[0][:, 1:]
    l1 = jnp.sum(jnp.abs(pred * mask - whd_target * mask))
    loss_f1 = l1 / (mask[:, 0].sum() + 1e-4)
    return loss_sum * 100.0 + loss_f1


# ----------------------------------- main ------------------------------------

if __name__ == "__main__":
    key = jax.random.PRNGKey(0)
    k = jax.random.split(key, 5)
    B = 2
    shapes = [(16, 16, 16), (8, 8, 8)]          # two deep-supervision levels

    # network outputs: 4 channels (heatmap logit + 3 whd regressions)
    output = [jax.random.normal(k[0], (B, 4) + shapes[0], jnp.float32),
              jax.random.normal(k[1], (B, 4) + shapes[1], jnp.float32)]
    # heatmap targets in [0,1], mostly zero with some peaks >= 0.9
    t0 = jax.random.uniform(k[2], (B, 1) + shapes[0], jnp.float32)
    t1 = jax.random.uniform(k[3], (B, 1) + shapes[1], jnp.float32)
    target = [jnp.where(t0 > 0.7, t0, 0.0), jnp.where(t1 > 0.7, t1, 0.0)]
    # whd regression target, zero outside object centers
    whd_u = jax.random.uniform(k[4], (B, 3) + shapes[0], jnp.float32)
    whd_target = jnp.where(whd_u > 0.5, whd_u * 3.0, 0.0)

    weight_factors = (1.0, 0.5)

    loss = deep_supervision_loss(output, target, whd_target, weight_factors)
    loss = jax.block_until_ready(loss)

    ref = _ref_loss(output, target, whd_target, weight_factors)
    assert jnp.allclose(loss, ref, rtol=1e-3, atol=1e-3), (float(loss), float(ref))

    print("KERNEL_OK")
</pallas_src>

<mosaic_0001>
module attributes {stable_mosaic.version = 11 : i64} {
  func.func @kernel(%arg0: i32, %arg1: i32, %arg2: memref<16x512xf32, #tpu.memory_space<vmem>>, %arg3: memref<16x512xf32, #tpu.memory_space<vmem>>, %arg4: memref<1x1xf32, #tpu.memory_space<vmem>>, %arg5: memref<1x1x1xf32, #tpu.memory_space<vmem>>, %arg6: memref<1x1x1xf32, #tpu.memory_space<vmem>>, %arg7: memref<1x1x1xf32, #tpu.memory_space<vmem>>, %arg8: memref<1x1x1xf32, #tpu.memory_space<vmem>>, %arg9: memref<1x512xf32, #tpu.memory_space<vmem>>, %arg10: memref<1x512xf32, #tpu.memory_space<vmem>>, %arg11: memref<1x512xf32, #tpu.memory_space<vmem>>, %arg12: memref<1x512xf32, #tpu.memory_space<vmem>>) attributes {dimension_semantics = [#tpu.dimension_semantics<parallel>, #tpu.dimension_semantics<arbitrary>], iteration_bounds = array<i64: 1, 1>, scalar_prefetch = 0 : i64, scratch_operands = 4 : i64, tpu.core_type = #tpu.core_type<tc>, window_params = [{transform_indices = @transform_0, window_bounds = array<i64: 16, 512>}, {transform_indices = @transform_1, window_bounds = array<i64: 16, 512>}, {pipeline_mode = #tpu.pipeline_mode<synchronous>, transform_indices = @transform_2, window_bounds = array<i64: 1, 1>}, {transform_indices = @transform_3, window_bounds = array<i64: 1, 1, 1>}, {transform_indices = @transform_4, window_bounds = array<i64: 1, 1, 1>}, {transform_indices = @transform_5, window_bounds = array<i64: 1, 1, 1>}, {transform_indices = @transform_6, window_bounds = array<i64: 1, 1, 1>}]} {
    %c0_i32 = arith.constant 0 : i32
    %0 = arith.cmpi eq, %arg1, %c0_i32 : i32
    %1 = arith.extui %0 : i1 to i32
    %c0_i32_0 = arith.constant 0 : i32
    %2 = arith.cmpi ne, %1, %c0_i32_0 : i32
    scf.if %2 {
      %cst_41 = arith.constant 0.000000e+00 : f32
      %77 = vector.broadcast %cst_41 : f32 to vector<1x512xf32>
      %c0_42 = arith.constant 0 : index
      %c0_43 = arith.constant 0 : index
      %78 = vector.load %arg9[%c0_42, %c0_43] : memref<1x512xf32, #tpu.memory_space<vmem>>, vector<1x512xf32>
      tpu.vector_store %arg9[%c0_42, %c0_43], %77 {strides = array<i32>} : memref<1x512xf32, #tpu.memory_space<vmem>>, vector<1x512xf32>,
      %cst_44 = arith.constant 0.000000e+00 : f32
      %79 = vector.broadcast %cst_44 : f32 to vector<1x512xf32>
      %c0_45 = arith.constant 0 : index
      %c0_46 = arith.constant 0 : index
      %80 = vector.load %arg10[%c0_45, %c0_46] : memref<1x512xf32, #tpu.memory_space<vmem>>, vector<1x512xf32>
      tpu.vector_store %arg10[%c0_45, %c0_46], %79 {strides = array<i32>} : memref<1x512xf32, #tpu.memory_space<vmem>>, vector<1x512xf32>,
      %cst_47 = arith.constant 0.000000e+00 : f32
      %81 = vector.broadcast %cst_47 : f32 to vector<1x512xf32>
      %c0_48 = arith.constant 0 : index
      %c0_49 = arith.constant 0 : index
      %82 = vector.load %arg11[%c0_48, %c0_49] : memref<1x512xf32, #tpu.memory_space<vmem>>, vector<1x512xf32>
      tpu.vector_store %arg11[%c0_48, %c0_49], %81 {strides = array<i32>} : memref<1x512xf32, #tpu.memory_space<vmem>>, vector<1x512xf32>,
      %cst_50 = arith.constant 0.000000e+00 : f32
      %83 = vector.broadcast %cst_50 : f32 to vector<1x512xf32>
      %c0_51 = arith.constant 0 : index
      %c0_52 = arith.constant 0 : index
      %84 = vector.load %arg12[%c0_51, %c0_52] : memref<1x512xf32, #tpu.memory_space<vmem>>, vector<1x512xf32>
      tpu.vector_store %arg12[%c0_51, %c0_52], %83 {strides = array<i32>} : memref<1x512xf32, #tpu.memory_space<vmem>>, vector<1x512xf32>,
    } else {
    }
    %c0 = arith.constant 0 : index
    %c0_1 = arith.constant 0 : index
    %3 = vector.load %arg2[%c0, %c0_1] : memref<16x512xf32, #tpu.memory_space<vmem>>, vector<16x512xf32>
    %c0_2 = arith.constant 0 : index
    %c0_3 = arith.constant 0 : index
    %4 = vector.load %arg3[%c0_2, %c0_3] : memref<16x512xf32, #tpu.memory_space<vmem>>, vector<16x512xf32>
    %5 = arith.negf %3 : vector<16x512xf32>
    %6 = math.exp %5 : vector<16x512xf32>
    %cst = arith.constant 1.000000e+00 : f32
    %7 = vector.broadcast %cst : f32 to vector<16x512xf32>
    %8 = arith.addf %7, %6 : vector<16x512xf32>
    %9 = arith.divf %7, %8 : vector<16x512xf32>
    %10 = math.log %9 : vector<16x512xf32>
    %cst_4 = arith.constant -9.21034049 : f32
    %cst_5 = arith.constant -1.000050e-04 : f32
    %11 = vector.broadcast %cst_4 : f32 to vector<16x512xf32>
    %12 = arith.maximumf %11, %10 : vector<16x512xf32>
    %13 = vector.broadcast %cst_5 : f32 to vector<16x512xf32>
    %14 = arith.minimumf %13, %12 : vector<16x512xf32>
    %15 = arith.subf %10, %3 : vector<16x512xf32>
    %cst_6 = arith.constant -9.21034049 : f32
    %cst_7 = arith.constant -1.000050e-04 : f32
    %16 = vector.broadcast %cst_6 : f32 to vector<16x512xf32>
    %17 = arith.maximumf %16, %15 : vector<16x512xf32>
    %18 = vector.broadcast %cst_7 : f32 to vector<16x512xf32>
    %19 = arith.minimumf %18, %17 : vector<16x512xf32>
    %cst_8 = arith.constant 0.899999976 : f32
    %20 = vector.broadcast %cst_8 : f32 to vector<16x512xf32>
    %21 = arith.cmpf oge, %4, %20 : vector<16x512xf32>
    %22 = arith.extui %21 : vector<16x512xi1> to vector<16x512xi32>
    %23 = arith.sitofp %22 : vector<16x512xi32> to vector<16x512xf32>
    %cst_9 = arith.constant 1.000000e+00 : f32
    %24 = vector.broadcast %cst_9 : f32 to vector<16x512xf32>
    %25 = arith.subf %24, %23 : vector<16x512xf32>
    %cst_10 = arith.constant 1.000000e+00 : f32
    %26 = vector.broadcast %cst_10 : f32 to vector<16x512xf32>
    %27 = arith.subf %26, %9 : vector<16x512xf32>
    %cst_11 = arith.constant 1.000000e+00 : f32
    %28 = vector.broadcast %cst_11 : f32 to vector<16x512xf32>
    %29 = arith.subf %28, %4 : vector<16x512xf32>
    %cst_12 = arith.constant 1.000000e+00 : f32
    %30 = vector.broadcast %cst_12 : f32 to vector<16x512xf32>
    %31 = arith.subf %30, %4 : vector<16x512xf32>
    %32 = arith.mulf %29, %31 : vector<16x512xf32>
    %33 = arith.mulf %27, %27 : vector<16x512xf32>
    %34 = arith.mulf %14, %33 : vector<16x512xf32>
    %35 = arith.mulf %34, %23 : vector<16x512xf32>
    %36 = arith.mulf %9, %9 : vector<16x512xf32>
    %37 = arith.mulf %19, %36 : vector<16x512xf32>
    %38 = arith.mulf %37, %32 : vector<16x512xf32>
    %39 = arith.mulf %38, %25 : vector<16x512xf32>
    %c0_13 = arith.constant 0 : index
    %c0_14 = arith.constant 0 : index
    %40 = vector.load %arg4[%c0_13, %c0_14] : memref<1x1xf32, #tpu.memory_space<vmem>>, vector<1x1xf32>
    %41 = vector.broadcast %40 : vector<1x1xf32> to vector<16x512xf32>
    %42 = arith.mulf %4, %41 : vector<16x512xf32>
    %cst_15 = arith.constant 0.000000e+00 : f32
    %43 = vector.broadcast %cst_15 : f32 to vector<16x512xf32>
    %44 = arith.cmpf ogt, %42, %43 : vector<16x512xf32>
    %cst_16 = arith.constant 1.000000e+03 : f32
    %45 = vector.broadcast %cst_16 : f32 to vector<16x512xf32>
    %46 = arith.mulf %45, %42 : vector<16x512xf32>
    %cst_17 = arith.constant 1.000000e+00 : f32
    %47 = vector.broadcast %cst_17 : f32 to vector<16x512xf32>
    %48 = arith.addf %47, %46 : vector<16x512xf32>
    %cst_18 = arith.constant 1.000000e+00 : f32
    %49 = vector.broadcast %cst_18 : f32 to vector<16x512xf32>
    %50 = arith.select %44, %48, %49 : vector<16x512xi1>, vector<16x512xf32>
    %51 = arith.subf %42, %9 : vector<16x512xf32>
    %52 = arith.mulf %50, %51 : vector<16x512xf32>
    %53 = arith.mulf %52, %51 : vector<16x512xf32>
    %c0_19 = arith.constant 0 : index
    %c0_20 = arith.constant 0 : index
    %54 = vector.load %arg9[%c0_19, %c0_20] : memref<1x512xf32, #tpu.memory_space<vmem>>, vector<1x512xf32>
    %cst_21 = arith.constant dense<0.000000e+00> : vector<512xf32>
    %55 = vector.multi_reduction <add>, %35, %cst_21 [0] : vector<16x512xf32> to vector<512xf32>
    %56 = vector.shape_cast %55 : vector<512xf32> to vector<1x512xf32>
    %57 = arith.addf %54, %56 : vector<1x512xf32>
    %c0_22 = arith.constant 0 : index
    %c0_23 = arith.constant 0 : index
    %58 = vector.load %arg9[%c0_22, %c0_23] : memref<1x512xf32, #tpu.memory_space<vmem>>, vector<1x512xf32>
    tpu.vector_store %arg9[%c0_22, %c0_23], %57 {strides = array<i32>} : memref<1x512xf32, #tpu.memory_space<vmem>>, vector<1x512xf32>,
    %c0_24 = arith.constant 0 : index
    %c0_25 = arith.constant 0 : index
    %59 = vector.load %arg10[%c0_24, %c0_25] : memref<1x512xf32, #tpu.memory_space<vmem>>, vector<1x512xf32>
    %cst_26 = arith.constant dense<0.000000e+00> : vector<512xf32>
    %60 = vector.multi_reduction <add>, %39, %cst_26 [0] : vector<16x512xf32> to vector<512xf32>
    %61 = vector.shape_cast %60 : vector<512xf32> to vector<1x512xf32>
    %62 = arith.addf %59, %61 : vector<1x512xf32>
    %c0_27 = arith.constant 0 : index
    %c0_28 = arith.constant 0 : index
    %63 = vector.load %arg10[%c0_27, %c0_28] : memref<1x512xf32, #tpu.memory_space<vmem>>, vector<1x512xf32>
    tpu.vector_store %arg10[%c0_27, %c0_28], %62 {strides = array<i32>} : memref<1x512xf32, #tpu.memory_space<vmem>>, vector<1x512xf32>,
    %c0_29 = arith.constant 0 : index
    %c0_30 = arith.constant 0 : index
    %64 = vector.load %arg11[%c0_29, %c0_30] : memref<1x512xf32, #tpu.memory_space<vmem>>, vector<1x512xf32>
    %cst_31 = arith.constant dense<0.000000e+00> : vector<512xf32>
    %65 = vector.multi_reduction <add>, %23, %cst_31 [0] : vector<16x512xf32> to vector<512xf32>
    %66 = vector.shape_cast %65 : vector<512xf32> to vector<1x512xf32>
    %67 = arith.addf %64, %66 : vector<1x512xf32>
    %c0_32 = arith.constant 0 : index
    %c0_33 = arith.constant 0 : index
    %68 = vector.load %arg11[%c0_32, %c0_33] : memref<1x512xf32, #tpu.memory_space<vmem>>, vector<1x512xf32>
    tpu.vector_store %arg11[%c0_32, %c0_33], %67 {strides = array<i32>} : memref<1x512xf32, #tpu.memory_space<vmem>>, vector<1x512xf32>,
    %c0_34 = arith.constant 0 : index
    %c0_35 = arith.constant 0 : index
    %69 = vector.load %arg12[%c0_34, %c0_35] : memref<1x512xf32, #tpu.memory_space<vmem>>, vector<1x512xf32>
    %cst_36 = arith.constant dense<0.000000e+00> : vector<512xf32>
    %70 = vector.multi_reduction <add>, %53, %cst_36 [0] : vector<16x512xf32> to vector<512xf32>
    %71 = vector.shape_cast %70 : vector<512xf32> to vector<1x512xf32>
    %72 = arith.addf %69, %71 : vector<1x512xf32>
    %c0_37 = arith.constant 0 : index
    %c0_38 = arith.constant 0 : index
    %73 = vector.load %arg12[%c0_37, %c0_38] : memref<1x512xf32, #tpu.memory_space<vmem>>, vector<1x512xf32>
    tpu.vector_store %arg12[%c0_37, %c0_38], %72 {strides = array<i32>} : memref<1x512xf32, #tpu.memory_space<vmem>>, vector<1x512xf32>,
    %c0_i32_39 = arith.constant 0 : i32
    %74 = arith.cmpi eq, %arg1, %c0_i32_39 : i32
    %75 = arith.extui %74 : i1 to i32
    %c0_i32_40 = arith.constant 0 : i32
    %76 = arith.cmpi ne, %75, %c0_i32_40 : i32
    scf.if %76 {
      %cst_41 = arith.constant 0.000000e+00 : f32
      %77 = vector.broadcast %cst_41 : f32 to vector<1x1x1xf32>
      %c0_42 = arith.constant 0 : index
      %c0_43 = arith.constant 0 : index
      %78 = vector.load %arg9[%c0_42, %c0_43] : memref<1x512xf32, #tpu.memory_space<vmem>>, vector<1x512xf32>
      %79 = vector.shape_cast %78 : vector<1x512xf32> to vector<1x1x512xf32>
      %cst_44 = arith.constant dense<0.000000e+00> : vector<1xf32>
      %80 = vector.multi_reduction <add>, %79, %cst_44 [1, 2] : vector<1x1x512xf32> to vector<1xf32>
      %81 = vector.shape_cast %80 : vector<1xf32> to vector<1x1x1xf32>
      %82 = vector.extract %81[0, 0, 0] : f32 from vector<1x1x1xf32>
      %83 = vector.broadcast %82 : f32 to vector<1x1x1xf32>
      %84 = arith.addf %77, %83 : vector<1x1x1xf32>
      %c0_45 = arith.constant 0 : index
      %c0_46 = arith.constant 0 : index
      %c0_47 = arith.constant 0 : index
      %85 = vector.load %arg5[%c0_45, %c0_46, %c0_47] : memref<1x1x1xf32, #tpu.memory_space<vmem>>, vector<1x1x1xf32>
      tpu.vector_store %arg5[%c0_45, %c0_46, %c0_47], %84 {strides = array<i32>} : memref<1x1x1xf32, #tpu.memory_space<vmem>>, vector<1x1x1xf32>,
      %cst_48 = arith.constant 0.000000e+00 : f32
      %86 = vector.broadcast %cst_48 : f32 to vector<1x1x1xf32>
      %c0_49 = arith.constant 0 : index
      %c0_50 = arith.constant 0 : index
      %87 = vector.load %arg10[%c0_49, %c0_50] : memref<1x512xf32, #tpu.memory_space<vmem>>, vector<1x512xf32>
      %88 = vector.shape_cast %87 : vector<1x512xf32> to vector<1x1x512xf32>
      %cst_51 = arith.constant dense<0.000000e+00> : vector<1xf32>
      %89 = vector.multi_reduction <add>, %88, %cst_51 [1, 2] : vector<1x1x512xf32> to vector<1xf32>
      %90 = vector.shape_cast %89 : vector<1xf32> to vector<1x1x1xf32>
      %91 = vector.extract %90[0, 0, 0] : f32 from vector<1x1x1xf32>
      %92 = vector.broadcast %91 : f32 to vector<1x1x1xf32>
      %93 = arith.addf %86, %92 : vector<1x1x1xf32>
      %c0_52 = arith.constant 0 : index
      %c0_53 = arith.constant 0 : index
      %c0_54 = arith.constant 0 : index
      %94 = vector.load %arg6[%c0_52, %c0_53, %c0_54] : memref<1x1x1xf32, #tpu.memory_space<vmem>>, vector<1x1x1xf32>
      tpu.vector_store %arg6[%c0_52, %c0_53, %c0_54], %93 {strides = array<i32>} : memref<1x1x1xf32, #tpu.memory_space<vmem>>, vector<1x1x1xf32>,
      %cst_55 = arith.constant 0.000000e+00 : f32
      %95 = vector.broadcast %cst_55 : f32 to vector<1x1x1xf32>
      %c0_56 = arith.constant 0 : index
      %c0_57 = arith.constant 0 : index
      %96 = vector.load %arg11[%c0_56, %c0_57] : memref<1x512xf32, #tpu.memory_space<vmem>>, vector<1x512xf32>
      %97 = vector.shape_cast %96 : vector<1x512xf32> to vector<1x1x512xf32>
      %cst_58 = arith.constant dense<0.000000e+00> : vector<1xf32>
      %98 = vector.multi_reduction <add>, %97, %cst_58 [1, 2] : vector<1x1x512xf32> to vector<1xf32>
      %99 = vector.shape_cast %98 : vector<1xf32> to vector<1x1x1xf32>
      %100 = vector.extract %99[0, 0, 0] : f32 from vector<1x1x1xf32>
      %101 = vector.broadcast %100 : f32 to vector<1x1x1xf32>
      %102 = arith.addf %95, %101 : vector<1x1x1xf32>
      %c0_59 = arith.constant 0 : index
      %c0_60 = arith.constant 0 : index
      %c0_61 = arith.constant 0 : index
      %103 = vector.load %arg7[%c0_59, %c0_60, %c0_61] : memref<1x1x1xf32, #tpu.memory_space<vmem>>, vector<1x1x1xf32>
      tpu.vector_store %arg7[%c0_59, %c0_60, %c0_61], %102 {strides = array<i32>} : memref<1x1x1xf32, #tpu.memory_space<vmem>>, vector<1x1x1xf32>,
      %cst_62 = arith.constant 0.000000e+00 : f32
      %104 = vector.broadcast %cst_62 : f32 to vector<1x1x1xf32>
      %c0_63 = arith.constant 0 : index
      %c0_64 = arith.constant 0 : index
      %105 = vector.load %arg12[%c0_63, %c0_64] : memref<1x512xf32, #tpu.memory_space<vmem>>, vector<1x512xf32>
      %106 = vector.shape_cast %105 : vector<1x512xf32> to vector<1x1x512xf32>
      %cst_65 = arith.constant dense<0.000000e+00> : vector<1xf32>
      %107 = vector.multi_reduction <add>, %106, %cst_65 [1, 2] : vector<1x1x512xf32> to vector<1xf32>
      %108 = vector.shape_cast %107 : vector<1xf32> to vector<1x1x1xf32>
      %109 = vector.extract %108[0, 0, 0] : f32 from vector<1x1x1xf32>
      %110 = vector.broadcast %109 : f32 to vector<1x1x1xf32>
      %111 = arith.addf %104, %110 : vector<1x1x1xf32>
      %c0_66 = arith.constant 0 : index
      %c0_67 = arith.constant 0 : index
      %c0_68 = arith.constant 0 : index
      %112 = vector.load %arg8[%c0_66, %c0_67, %c0_68] : memref<1x1x1xf32, #tpu.memory_space<vmem>>, vector<1x1x1xf32>
      tpu.vector_store %arg8[%c0_66, %c0_67, %c0_68], %111 {strides = array<i32>} : memref<1x1x1xf32, #tpu.memory_space<vmem>>, vector<1x1x1xf32>,
    } else {
    }
    return
  }
  func.func @transform_0(%arg0: i32, %arg1: i32) -> (i32, i32) {
    %c1_i32 = arith.constant 1 : i32
    %0 = arith.muli %arg0, %c1_i32 : i32
    %1 = arith.addi %0, %arg1 : i32
    %c0_i32 = arith.constant 0 : i32
    %c0_i32_0 = arith.constant 0 : i32
    return %1, %c0_i32 : i32, i32
  }
  func.func @transform_1(%arg0: i32, %arg1: i32) -> (i32, i32) {
    %c1_i32 = arith.constant 1 : i32
    %0 = arith.muli %arg0, %c1_i32 : i32
    %1 = arith.addi %0, %arg1 : i32
    %c0_i32 = arith.constant 0 : i32
    %c0_i32_0 = arith.constant 0 : i32
    return %1, %c0_i32 : i32, i32
  }
  func.func @transform_2(%arg0: i32, %arg1: i32) -> (i32, i32) {
    %c0_i32 = arith.constant 0 : i32
    %c0_i32_0 = arith.constant 0 : i32
    %c0_i32_1 = arith.constant 0 : i32
    return %c0_i32, %c0_i32_0 : i32, i32
  }
  func.func @transform_3(%arg0: i32, %arg1: i32) -> (i32, i32, i32) {
    %c0_i32 = arith.constant 0 : i32
    %c0_i32_0 = arith.constant 0 : i32
    %c0_i32_1 = arith.constant 0 : i32
    return %arg0, %c0_i32, %c0_i32_0 : i32, i32, i32
  }
  func.func @transform_4(%arg0: i32, %arg1: i32) -> (i32, i32, i32) {
    %c0_i32 = arith.constant 0 : i32
    %c0_i32_0 = arith.constant 0 : i32
    %c0_i32_1 = arith.constant 0 : i32
    return %arg0, %c0_i32, %c0_i32_0 : i32, i32, i32
  }
  func.func @transform_5(%arg0: i32, %arg1: i32) -> (i32, i32, i32) {
    %c0_i32 = arith.constant 0 : i32
    %c0_i32_0 = arith.constant 0 : i32
    %c0_i32_1 = arith.constant 0 : i32
    return %arg0, %c0_i32, %c0_i32_0 : i32, i32, i32
  }
  func.func @transform_6(%arg0: i32, %arg1: i32) -> (i32, i32, i32) {
    %c0_i32 = arith.constant 0 : i32
    %c0_i32_0 = arith.constant 0 : i32
    %c0_i32_1 = arith.constant 0 : i32
    return %arg0, %c0_i32, %c0_i32_0 : i32, i32, i32
  }
}

</mosaic_0001>

<bundles_post_ra>
// kernel: tpu_custom_call.1
= control target key start
LH: loop header
LB: loop body
LE: loop exit
PB: predicated region body
PF: predicated region fallthrough
CT: control target
= control target key end

     0   :  { %s1599_s0 = inlined_call_operand.hbm [shape: f32[16,512], index: 0, kind: input, shape index: {}]   ;;  %s1600_s1 = inlined_call_operand.hbm [shape: f32[16,512], index: 1, kind: input, shape index: {}]   ;;  %s1601_s2 = inlined_call_operand.<no memory space> [shape: f32[1,1], index: 2, kind: input, shape index: {}]   ;;  %s1602_s3 = inlined_call_operand.hbm [shape: f32[1,1,1], index: 3, kind: output, shape index: {0}]   ;;  %s1603_s4 = inlined_call_operand.hbm [shape: f32[1,1,1], index: 4, kind: output, shape index: {1}]   ;;  %s1604_s5 = inlined_call_operand.hbm [shape: f32[1,1,1], index: 5, kind: output, shape index: {2}]   ;;  %s1605_s6 = inlined_call_operand.hbm [shape: f32[1,1,1], index: 6, kind: output, shape index: {3}]  }
   0x1   :  { %v12_v0 = vstv %s1601_s2 }
   0x2   :  { %13 = vst [vmem:[#allocation6] sm:$0x1] %v12_v0 }
   0x3   :  { %14 = vsyncpa [#allocation8], 0 }
   0x4   :  { %15 = vsyncpa [#allocation11], 0 }
   0x5   :  { %16 = vsyncpa [#allocation9], 0 }
   0x6   :  { %17 = vsyncpa [#allocation14], 0 }
   0x7   :  { %18 = vsyncpa [#allocation17], 0  ;;  %s1080_s23 = smov [#allocation7]   ;;  %s938_s27 = scalar_lea.hbm %s1599_s0, 1024 }
   0x8   :  { %s29_s24 = sshll.u32 %s1080_s23, 4  ;;  %p939_p0 = scmp.ne.s32.totalorder %s1599_s0, %s938_s27  ;;  %s30_s24 = int_to_ptr.vmem [resolvable:$true] %s29_s24 }
   0x9   :  { %p942_p1 = scmp.lt.u32.totalorder %s938_s27, %s1599_s0 }
   0xb   :  { %p944_p2 = pnand %p942_p1, %p939_p0 }
   0xd   :  { %947 = shalt.err (!%p944_p2)
}
   0xe   :  { %s948_s2 = scalar_lea.vmem %s30_s24, 1024  ;;  %p953_p4 = scmp.lt.s32.totalorder %s30_s24, %s30_s24 }
   0xf   :  { %p949_p3 = scmp.ne.s32.totalorder %s30_s24, %s948_s2  ;;  %p954_p5 = scmp.lt.s32.totalorder %s948_s2, %s948_s2 }
  0x11   :  { %p955_p6 = por %p954_p5, %p953_p4 }
  0x13   :  { %p956_p7 = pnand %p955_p6, %p949_p3 }
  0x15   :  { %959 = shalt.err (!%p956_p7)
}
  0x16   :  { %s1081_s8 = smov 512   ;;  %s1082_s9 = smov 32  }
  0x17   :  { %35 = dma.hbm_to_vmem [thread:$0]  %s1599_s0, 1024, %s30_s24, [#allocation8], %s1081_s8, %s1081_s8, %s1082_s9  }
  0x18   :  { %s1083_s12 = smov [#allocation10]   ;;  %s960_s16 = scalar_lea.hbm %s1600_s1, 1024 }
  0x19   :  { %s46_s13 = sshll.u32 %s1083_s12, 4  ;;  %p961_p8 = scmp.ne.s32.totalorder %s1600_s1, %s960_s16  ;;  %s47_s13 = int_to_ptr.vmem [resolvable:$true] %s46_s13 }
  0x1a   :  { %p964_p9 = scmp.lt.u32.totalorder %s960_s16, %s1600_s1 }
  0x1c   :  { %p966_p10 = pnand %p964_p9, %p961_p8 }
  0x1e   :  { %969 = shalt.err (!%p966_p10)
}
  0x1f   :  { %s970_s21 = scalar_lea.vmem %s47_s13, 1024  ;;  %p975_p12 = scmp.lt.s32.totalorder %s47_s13, %s47_s13 }
  0x20   :  { %p971_p11 = scmp.ne.s32.totalorder %s47_s13, %s970_s21  ;;  %p976_p13 = scmp.lt.s32.totalorder %s970_s21, %s970_s21 }
  0x22   :  { %p977_p0 = por %p976_p13, %p975_p12 }
  0x24   :  { %p978_p1 = pnand %p977_p0, %p971_p11 }
  0x26   :  { %981 = shalt.err (!%p978_p1)
}
  0x27   :  { %52 = dma.hbm_to_vmem [thread:$0]  %s1600_s1, 1024, %s47_s13, [#allocation11], %s1081_s8, %s1081_s8, %s1082_s9  }
  0x28   :  { %1070 = dma.done.wait [#allocation8], 1024  }
  0x29   :  { %1071 = vsyncadd [#allocation8], 4294966272 }
  0x2a   :  { %1072 = dma.done.wait [#allocation11], 1024  }
  0x2b   :  { %1073 = vsyncadd [#allocation11], 4294966272  ;;  %v1084_v1 = vmov 0   ;;  %v869_v2 = vld [vmem:[#allocation6] ss:$0 sm:$0xff]  ;;  %v1153_v3 = vld [vmem:[#allocation7] sm:$0xff] }
  0x2c   :  { %889 = vset.pattern.permute.xlu0 %v1084_v1  ;;  %v1155_v4 = vld [vmem:[#allocation7 + $0x8] sm:$0xff]  ;;  %v1157_v5 = vld [vmem:[#allocation7 + $0x10] sm:$0xff]  ;;  %v1159_v6 = vld [vmem:[#allocation7 + $0x18] sm:$0xff]  ;;  %v853_v7 = vmul.f32 -1.442695, %v1153_v3  ;;  %v1085_v27 = vmov 0.0  }
  0x2d   :  { %316 = vperm.xlu0 %889, %v869_v2   ;;  %v1162_v8 = vld [vmem:[#allocation7 + $0x20] sm:$0xff]  ;;  %v1164_v9 = vld [vmem:[#allocation7 + $0x28] sm:$0xff]  ;;  %v854_v10 = vmul.f32 -1.442695, %v1155_v4  ;;  %v1167_v11 = vld [vmem:[#allocation7 + $0x30] sm:$0xff]  ;;  %vm652_vm9 = vcmask 1040384  }
  0x2e   :  { %v1169_v12 = vld [vmem:[#allocation7 + $0x38] sm:$0xff]  ;;  %890 = vpow2.f32 %v853_v7  ;;  %v855_v13 = vmul.f32 -1.442695, %v1157_v5  ;;  %v1172_v14 = vld [vmem:[#allocation10] sm:$0xff]  ;;  %v1174_v15 = vld [vmem:[#allocation10 + $0x8] sm:$0xff]  ;;  %s1087_s1 = smov [#allocation12]  }
  0x2f   :  { %1631 = vst [vmem:[#allocation23_spill] sm:$0xff] %v1172_v14  ;;  %1632 = vst [vmem:[#allocation24_spill] sm:$0xff] %v1174_v15  ;;  %892 = vpow2.f32 %v854_v10  ;;  %v856_v16 = vmul.f32 -1.442695, %v1159_v6  ;;  %v1177_v17 = vld [vmem:[#allocation10 + $0x10] sm:$0xff]  ;;  %v1179_v18 = vld [vmem:[#allocation10 + $0x18] sm:$0xff] }
  0x30   :  { %1633 = vst [vmem:[#allocation25_spill] sm:$0xff] %v1177_v17  ;;  %1634 = vst [vmem:[#allocation26_spill] sm:$0xff] %v1179_v18  ;;  %894 = vpow2.f32 %v855_v13  ;;  %v857_v19 = vmul.f32 -1.442695, %v1162_v8  ;;  %v858_v20 = vmul.f32 -1.442695, %v1164_v9 }
  0x31   :  { %v1183_v21 = vld [vmem:[#allocation10 + $0x20] sm:$0xff]  ;;  %v1185_v22 = vld [vmem:[#allocation10 + $0x28] sm:$0xff]  ;;  %896 = vpow2.f32 %v856_v16  ;;  %v859_v23 = vmul.f32 -1.442695, %v1167_v11  ;;  %v860_v24 = vmul.f32 -1.442695, %v1169_v12 }
  0x32   :  { %1635 = vst [vmem:[#allocation27_spill] sm:$0xff] %v1183_v21  ;;  %1636 = vst [vmem:[#allocation28_spill] sm:$0xff] %v1185_v22  ;;  %v1189_v25 = vld [vmem:[#allocation10 + $0x30] sm:$0xff]  ;;  %v1191_v26 = vld [vmem:[#allocation10 + $0x38] sm:$0xff]  ;;  %898 = vpow2.f32 %v857_v19  ;;  %vm197_vm0 = vcmp.ge.f32.partialorder %v1172_v14, 0.9 }
  0x33   :  { %1637 = vst [vmem:[#allocation29_spill] sm:$0xff] %v1189_v25  ;;  %1638 = vst [vmem:[#allocation30_spill] sm:$0xff] %v1191_v26  ;;  %vm198_vm1 = vcmp.ge.f32.partialorder %v1174_v15, 0.9  ;;  %900 = vpow2.f32 %v858_v20  ;;  %vm199_vm2 = vcmp.ge.f32.partialorder %v1177_v17, 0.9 }
  0x34   :  { %vm200_vm3 = vcmp.ge.f32.partialorder %v1179_v18, 0.9  ;;  %vm201_vm4 = vcmp.ge.f32.partialorder %v1183_v21, 0.9  ;;  %902 = vpow2.f32 %v859_v23  ;;  %vm202_vm5 = vcmp.ge.f32.partialorder %v1185_v22, 0.9 }
  0x35   :  { %vm203_vm6 = vcmp.ge.f32.partialorder %v1189_v25, 0.9  ;;  %vm204_vm7 = vcmp.ge.f32.partialorder %v1191_v26, 0.9  ;;  %904 = vpow2.f32 %v860_v24  ;;  %v1202_v28 = vsel %vm197_vm0, 1.0, %v1085_v27  ;;  %s802_s23 = sshll.u32 %s1087_s1, 4  ;;  %s803_s23 = int_to_ptr.vmem [resolvable:$true] %s802_s23 }
  0x36   :  { %v1205_v29 = vsel %vm198_vm1, 1.0, %v1085_v27  ;;  %v1208_v30 = vsel %vm199_vm2, 1.0, %v1085_v27  ;;  %v1211_v31 = vsel %vm200_vm3, 1.0, %v1085_v27  ;;  %v1214_v32 = vsel %vm201_vm4, 1.0, %v1085_v27  ;;  %s1088_s25 = smov [#allocation13]   ;;  %s1089_s27 = smov [#allocation15]  }
  0x37   :  { %v1217_v33 = vsel %vm202_vm5, 1.0, %v1085_v27  ;;  %v1220_v34 = vsel %vm203_vm6, 1.0, %v1085_v27  ;;  %v1223_v35 = vsel %vm204_vm7, 1.0, %v1085_v27  ;;  %v237_v39 = vsub.f32 1.0, %v1172_v14  ;;  %s812_s26 = sshll.u32 %s1088_s25, 4  ;;  %s822_s28 = sshll.u32 %s1089_s27, 4  ;;  %s1532_s26 = int_to_ptr.vmem [resolvable:$true] %s812_s26  ;;  %s1534_s28 = int_to_ptr.vmem [resolvable:$true] %s822_s28 }
  0x38   :  { %v891_v36 = vpop.eup %890  ;;  %v238_v52 = vsub.f32 1.0, %v1174_v15  ;;  %v239_v53 = vsub.f32 1.0, %v1177_v17  ;;  %v240_v56 = vsub.f32 1.0, %v1179_v18  ;;  %v241_v57 = vsub.f32 1.0, %v1183_v21  ;;  %s982_s7 = scalar_lea.vmem %s803_s23, 16  ;;  %s986_s2 = scalar_lea.vmem %s803_s23, 32 }
  0x39   :  { %v893_v40 = vpop.eup %892  ;;  %v117_v41 = vadd.f32 1.0, %v891_v36  ;;  %v242_v60 = vsub.f32 1.0, %v1185_v22  ;;  %v243_v61 = vsub.f32 1.0, %v1189_v25  ;;  %v244_v0 = vsub.f32 1.0, %v1191_v26  ;;  %p983_p2 = scmp.ne.s32.totalorder %s803_s23, %s982_s7  ;;  %p987_p3 = scmp.lt.s32.totalorder %s803_s23, %s803_s23 }
  0x3a   :  { %v895_v45 = vpop.eup %894  ;;  %v118_v46 = vadd.f32 1.0, %v893_v40  ;;  %v1241_v1 = vmul.f32 %v237_v39, %v237_v39  ;;  %v508_v10 = vadd.f32 %v1214_v32, %v1202_v28  ;;  %v515_v13 = vadd.f32 %v1217_v33, %v1205_v29  ;;  %p988_p4 = scmp.lt.s32.totalorder %s986_s2, %s982_s7 }
  0x3b   :  { %v897_v50 = vpop.eup %896  ;;  %v119_v51 = vadd.f32 1.0, %v895_v45  ;;  %906 = vrcp.f32 %v117_v41  ;;  %v522_v19 = vadd.f32 %v1220_v34, %v1208_v30  ;;  %v529_v20 = vadd.f32 %v1223_v35, %v1211_v31 }
  0x3c   :  { %v899_v54 = vpop.eup %898  ;;  %v120_v55 = vadd.f32 1.0, %v897_v50  ;;  %908 = vrcp.f32 %v118_v46  ;;  %v509_v23 = vrot.slane %v508_v10, 4  ;;  %v516_v24 = vrot.slane %v515_v13, 4  ;;  %p989_p5 = por %p988_p4, %p987_p3 }
  0x3d   :  { %v901_v58 = vpop.eup %900  ;;  %v121_v59 = vadd.f32 1.0, %v899_v54  ;;  %910 = vrcp.f32 %v119_v51  ;;  %v69_v36 = vlaneseq  ;;  %v523_v39 = vrot.slane %v522_v19, 4 }
  0x3e   :  { %v903_v62 = vpop.eup %902  ;;  %v122_v63 = vadd.f32 1.0, %v901_v58  ;;  %912 = vrcp.f32 %v120_v55  ;;  %v530_v40 = vrot.slane %v529_v20, 4  ;;  %v1251_v41 = vmul.f32 %v238_v52, %v238_v52  ;;  %p990_p6 = pnand %p989_p5, %p983_p2 }
  0x3f   :  { %v905_v2 = vpop.eup %904  ;;  %v123_v7 = vadd.f32 1.0, %v903_v62  ;;  %914 = vrcp.f32 %v121_v59  ;;  %v510_v45 = vadd.f32 %v509_v23, %v508_v10  ;;  %v517_v46 = vadd.f32 %v516_v24, %v515_v13 }
  0x40   :  { %v124_v16 = vadd.f32 1.0, %v905_v2  ;;  %916 = vrcp.f32 %v122_v63  ;;  %vm1253_vm8 = vcmp.lt.s32.totalorder %v69_v36, 512  ;;  %v1639_v50 = vmov 0 }
  0x41   :  { %918 = vrcp.f32 %v123_v7  ;;  %v1640_v50 = vsel %vm1253_vm8, 4294967295, %v1639_v50  ;;  %v1257_v51 = vmul.f32 %v239_v53, %v239_v53  ;;  %v1259_v54 = vmul.f32 %v240_v56, %v240_v56  ;;  %75 = vst.msk [vmem:[#allocation4] sm:$0xf] %vm1253_vm8, %v1085_v27  ;;  %76 = vst.msk [vmem:[#allocation5] sm:$0xf] %vm1253_vm8, %v1085_v27 }
  0x42   :  { %920 = vrcp.f32 %v124_v16  ;;  %1641 = vst [vmem:[#allocation31_spill] sm:$0xff] %v1640_v50  ;;  %v1261_v55 = vmul.f32 %v241_v57, %v241_v57  ;;  %v1086_v52 = vmov 1966171168   ;;  %73 = vst.msk [vmem:[#allocation2] sm:$0xf] %vm1253_vm8, %v1085_v27  ;;  %v1279_v56 = vmul.f32 %v242_v60, %v242_v60 }
  0x43   :  { %v1269_v58 = vunpack.c.l.s4 %v1086_v52  ;;  %74 = vst.msk [vmem:[#allocation3] sm:$0xf] %vm1253_vm8, %v1085_v27  ;;  %v1281_v57 = vmul.f32 %v243_v61, %v243_v61  ;;  %v1283_v59 = vmul.f32 %v244_v0, %v244_v0  ;;  %v524_v62 = vadd.f32 %v523_v39, %v522_v19 }
  0x44   :  { %v511_v7 = vrot.slane %v510_v45, 2  ;;  %v531_v10 = vadd.f32 %v530_v40, %v529_v20  ;;  %v518_v60 = vrot.slane %v517_v46, 2  ;;  %v1293_v61 = vshrl.u32 %v69_v36, 7 }
  0x45   :  { %v1277_v53 = vpop.eup %906  ;;  %1643 = vst [vmem:[#allocation33_spill] sm:$0xff] %v1281_v57  ;;  %1644 = vst [vmem:[#allocation34_spill] sm:$0xff] %v1283_v59  ;;  %v420_v20 = vunpack.c.0.s8 %v1269_v58  ;;  %v525_v39 = vrot.slane %v524_v62, 2  ;;  %vm671_vm2 = vcmask 0  }
  0x46   :  { %1642 = vst [vmem:[#allocation32_spill] sm:$0xff] %v1277_v53  ;;  %v1285_v63 = vpop.eup %908  ;;  %922 = vlog2.f32 %v1277_v53  ;;  %v229_v2 = vsub.f32 1.0, %v1277_v53  ;;  %1647 = vst [vmem:[#allocation37_spill] sm:$0xff] %v1293_v61  ;;  %v1301_v19 = vmul.f32 %v1277_v53, %v1277_v53  ;;  %v512_v49 = vadd.f32 %v511_v7, %v510_v45 }
  0x47   :  { %1645 = vst [vmem:[#allocation35_spill] sm:$0xff] %v1285_v63  ;;  %v1289_v13 = vpop.eup %910  ;;  %924 = vlog2.f32 %v1285_v63  ;;  %v230_v27 = vsub.f32 1.0, %v1285_v63  ;;  %v1310_v36 = vmul.f32 %v1285_v63, %v1285_v63  ;;  %v519_v63 = vadd.f32 %v518_v60, %v517_v46 }
  0x48   :  { %1646 = vst [vmem:[#allocation36_spill] sm:$0xff] %v1289_v13  ;;  %v1295_v0 = vpop.eup %912  ;;  %926 = vlog2.f32 %v1289_v13  ;;  %v231_v16 = vsub.f32 1.0, %v1289_v13  ;;  %v1315_v52 = vmul.f32 %v229_v2, %v229_v2  ;;  %v1319_v58 = vmul.f32 %v1289_v13, %v1289_v13 }
  0x49   :  { %1648 = vst [vmem:[#allocation38_spill] sm:$0xff] %v1295_v0  ;;  %v1304_v23 = vpop.eup %914  ;;  %928 = vlog2.f32 %v1295_v0  ;;  %v232_v24 = vsub.f32 1.0, %v1295_v0  ;;  %v1326_v43 = vmul.f32 %v230_v27, %v230_v27  ;;  %v1335_v38 = vmul.f32 %v1295_v0, %v1295_v0 }
  0x4a   :  { %1649 = vst [vmem:[#allocation39_spill] sm:$0xff] %v1304_v23  ;;  %v1312_v40 = vpop.eup %916  ;;  %930 = vlog2.f32 %v1304_v23  ;;  %v233_v47 = vsub.f32 1.0, %v1304_v23  ;;  %v1331_v2 = vmul.f32 %v231_v16, %v231_v16  ;;  %v1339_v45 = vmul.f32 %v1304_v23, %v1304_v23 }
  0x4b   :  { %1650 = vst [vmem:[#allocation40_spill] sm:$0xff] %v1312_v40  ;;  %v1321_v48 = vpop.eup %918  ;;  %932 = vlog2.f32 %v1312_v40  ;;  %v234_v44 = vsub.f32 1.0, %v1312_v40  ;;  %v1344_v37 = vmul.f32 %v232_v24, %v232_v24  ;;  %v1348_v16 = vmul.f32 %v1312_v40, %v1312_v40 }
  0x4c   :  { %1651 = vst [vmem:[#allocation41_spill] sm:$0xff] %v1321_v48  ;;  %v1328_v42 = vpop.eup %920  ;;  %934 = vlog2.f32 %v1321_v48  ;;  %v235_v7 = vsub.f32 1.0, %v1321_v48  ;;  %v513_v13 = vrot.slane %v512_v49, 1  ;;  %v526_v0 = vadd.f32 %v525_v39, %v524_v62 }
  0x4d   :  { %1652 = vst [vmem:[#allocation42_spill] sm:$0xff] %v1328_v42  ;;  %936 = vlog2.f32 %v1328_v42  ;;  %v236_v27 = vsub.f32 1.0, %v1328_v42  ;;  %v1350_v53 = vmul.f32 %v233_v47, %v233_v47  ;;  %v1352_v26 = vmul.f32 %v234_v44, %v234_v44 }
  0x4e   :  { %v1356_v23 = vmul.f32 %v1321_v48, %v1321_v48  ;;  %v532_v25 = vrot.slane %v531_v10, 2  ;;  %v1360_v24 = vmul.f32 %v1328_v42, %v1328_v42  ;;  %v1362_v21 = vadd.f32 %v513_v13, %v512_v49 }
  0x4f   :  { %v520_v40 = vrot.slane %v519_v63, 1  ;;  %v527_v18 = vrot.slane %v526_v0, 1  ;;  %v1364_v47 = vmul.f32 %v235_v7, %v235_v7  ;;  %v1366_v44 = vmul.f32 %v236_v27, %v236_v27 }
  0x50   :  { %v923_v22 = vpop.eup %922  ;;  %1653 = vst [vmem:[#allocation43_spill] sm:$0xff] %v1362_v21  ;;  %v1368_v60 = vadd.f32 %v532_v25, %v531_v10  ;;  %v1375_v42 = vsub.s32 %v420_v20, %v1293_v61 }
  0x51   :  { %v925_v46 = vpop.eup %924  ;;  %v142_v62 = vmul.f32 0.6931472, %v923_v22  ;;  %v1370_v17 = vadd.f32 %v520_v40, %v519_v63  ;;  %v1372_v15 = vadd.f32 %v527_v18, %v526_v0 }
  0x52   :  { %1654 = vst [vmem:[#allocation44_spill] sm:$0xff] %v1368_v60  ;;  %v927_v39 = vpop.eup %926  ;;  %v144_v48 = vmul.f32 0.6931472, %v925_v46  ;;  %1657 = vst [vmem:[#allocation47_spill] sm:$0xff] %v1375_v42 }
  0x53   :  { %1655 = vst [vmem:[#allocation45_spill] sm:$0xff] %v1370_v17  ;;  %1656 = vst [vmem:[#allocation46_spill] sm:$0xff] %v1372_v15  ;;  %v929_v49 = vpop.eup %928  ;;  %v146_v13 = vmul.f32 0.6931472, %v927_v39  ;;  %v157_v14 = vmax.f32 %v142_v62, -9.2103405  ;;  %v173_v22 = vsub.f32 %v142_v62, %v1153_v3 }
  0x54   :  { %v931_v27 = vpop.eup %930  ;;  %v148_v50 = vmul.f32 0.6931472, %v929_v49  ;;  %v158_v25 = vmax.f32 %v144_v48, -9.2103405  ;;  %v174_v10 = vsub.f32 %v144_v48, %v1155_v4 }
  0x55   :  { %v933_v18 = vpop.eup %932  ;;  %v150_v0 = vmul.f32 0.6931472, %v931_v27  ;;  %v159_v40 = vmax.f32 %v146_v13, -9.2103405  ;;  %v165_v20 = vmin.f32 %v157_v14, -0.000100005  ;;  %v175_v46 = vsub.f32 %v146_v13, %v1157_v5 }
  0x56   :  { %v935_v39 = vpop.eup %934  ;;  %v152_v61 = vmul.f32 0.6931472, %v933_v18  ;;  %v160_v42 = vmax.f32 %v148_v50, -9.2103405  ;;  %v166_v3 = vmin.f32 %v158_v25, -0.000100005  ;;  %v176_v62 = vsub.f32 %v148_v50, %v1159_v6 }
  0x57   :  { %v937_v7 = vpop.eup %936  ;;  %v154_v49 = vmul.f32 0.6931472, %v935_v39  ;;  %v161_v15 = vmax.f32 %v150_v0, -9.2103405  ;;  %v167_v60 = vmin.f32 %v159_v40, -0.000100005  ;;  %v177_v4 = vsub.f32 %v150_v0, %v1162_v8 }
  0x58   :  { %v156_v48 = vmul.f32 0.6931472, %v937_v7  ;;  %v162_v63 = vmax.f32 %v152_v61, -9.2103405  ;;  %v168_v17 = vmin.f32 %v160_v42, -0.000100005  ;;  %v178_v27 = vsub.f32 %v152_v61, %v1164_v9 }
  0x59   :  { %v163_v14 = vmax.f32 %v154_v49, -9.2103405  ;;  %v169_v21 = vmin.f32 %v161_v15, -0.000100005  ;;  %v179_v5 = vsub.f32 %v154_v49, %v1167_v11  ;;  %v181_v13 = vmax.f32 %v173_v22, -9.2103405 }
  0x5a   :  { %v164_v18 = vmax.f32 %v156_v48, -9.2103405  ;;  %v170_v25 = vmin.f32 %v162_v63, -0.000100005  ;;  %v180_v6 = vsub.f32 %v156_v48, %v1169_v12  ;;  %v182_v50 = vmax.f32 %v174_v10, -9.2103405 }
  0x5b   :  { %v171_v39 = vmin.f32 %v163_v14, -0.000100005  ;;  %v183_v59 = vmax.f32 %v175_v46, -9.2103405  ;;  %v184_v40 = vmax.f32 %v176_v62, -9.2103405  ;;  %v261_v8 = vmul.f32 %v1315_v52, %v165_v20 }
  0x5c   :  { %v172_v7 = vmin.f32 %v164_v18, -0.000100005  ;;  %v185_v0 = vmax.f32 %v177_v4, -9.2103405  ;;  %v186_v42 = vmax.f32 %v178_v27, -9.2103405  ;;  %v262_v9 = vmul.f32 %v1326_v43, %v166_v3 }
  0x5d   :  { %v187_v61 = vmax.f32 %v179_v5, -9.2103405  ;;  %v188_v15 = vmax.f32 %v180_v6, -9.2103405  ;;  %v189_v57 = vmin.f32 %v181_v13, -0.000100005  ;;  %v263_v11 = vmul.f32 %v1331_v2, %v167_v60 }
  0x5e   :  { %v190_v22 = vmin.f32 %v182_v50, -0.000100005  ;;  %v191_v63 = vmin.f32 %v183_v59, -0.000100005  ;;  %v192_v49 = vmin.f32 %v184_v40, -0.000100005  ;;  %v264_v12 = vmul.f32 %v1344_v37, %v168_v17 }
  0x5f   :  { %v193_v10 = vmin.f32 %v185_v0, -0.000100005  ;;  %v194_v46 = vmin.f32 %v186_v42, -0.000100005  ;;  %v195_v62 = vmin.f32 %v187_v61, -0.000100005  ;;  %v265_v52 = vmul.f32 %v1350_v53, %v169_v21 }
  0x60   :  { %v196_v20 = vmin.f32 %v188_v15, -0.000100005  ;;  %v266_v4 = vmul.f32 %v1352_v26, %v170_v25  ;;  %v267_v43 = vmul.f32 %v1364_v47, %v171_v39  ;;  %v268_v3 = vmul.f32 %v1366_v44, %v172_v7  ;;  %v1659_v50 = vld [vmem:[#allocation34_spill] sm:$0xff] }
  0x61   :  { %v269_v48 = vmul.f32 %v1202_v28, %v261_v8  ;;  %v270_v2 = vmul.f32 %v1205_v29, %v262_v9  ;;  %v271_v59 = vmul.f32 %v1208_v30, %v263_v11  ;;  %v272_v17 = vmul.f32 %v1211_v31, %v264_v12 }
  0x62   :  { %v273_v37 = vmul.f32 %v1214_v32, %v265_v52  ;;  %v274_v60 = vmul.f32 %v1217_v33, %v266_v4  ;;  %v275_v21 = vmul.f32 %v1220_v34, %v267_v43  ;;  %v276_v26 = vmul.f32 %v1223_v35, %v268_v3 }
  0x63   :  { %v285_v53 = vmul.f32 %v1301_v19, %v189_v57  ;;  %v286_v47 = vmul.f32 %v1310_v36, %v190_v22  ;;  %v287_v44 = vmul.f32 %v1319_v58, %v191_v63  ;;  %v288_v27 = vmul.f32 %v1335_v38, %v192_v49  ;;  %v1658_v58 = vld [vmem:[#allocation33_spill] sm:$0xff] }
  0x64   :  { %v289_v14 = vmul.f32 %v1339_v45, %v193_v10  ;;  %v290_v5 = vmul.f32 %v1348_v16, %v194_v46  ;;  %v291_v13 = vmul.f32 %v1356_v23, %v195_v62  ;;  %v292_v18 = vmul.f32 %v1360_v24, %v196_v20 }
  0x65   :  { %v293_v25 = vmul.f32 %v285_v53, %v1241_v1  ;;  %v294_v6 = vmul.f32 %v286_v47, %v1251_v41  ;;  %v295_v57 = vmul.f32 %v287_v44, %v1257_v51  ;;  %v296_v19 = vmul.f32 %v288_v27, %v1259_v54 }
  0x66   :  { %v297_v36 = vmul.f32 %v289_v14, %v1261_v55  ;;  %v298_v38 = vmul.f32 %v290_v5, %v1279_v56  ;;  %v299_v45 = vmul.f32 %v291_v13, %v1658_v58  ;;  %v300_v16 = vmul.f32 %v292_v18, %v1659_v50 }
  0x67   :  { %v1660_v23 = vsub.f32 1.0, %v1202_v28  ;;  %v1661_v24 = vsub.f32 1.0, %v1205_v29  ;;  %v1662_v41 = vsub.f32 1.0, %v1208_v30  ;;  %v1663_v51 = vsub.f32 1.0, %v1211_v31 }
  0x68   :  { %v1664_v55 = vsub.f32 1.0, %v1214_v32  ;;  %v1665_v56 = vsub.f32 1.0, %v1217_v33  ;;  %v1666_v0 = vsub.f32 1.0, %v1220_v34  ;;  %v1667_v28 = vsub.f32 1.0, %v1223_v35 }
  0x69   :  { %v301_v39 = vmul.f32 %v293_v25, %v1660_v23  ;;  %v302_v1 = vmul.f32 %v294_v6, %v1661_v24  ;;  %v303_v40 = vmul.f32 %v295_v57, %v1662_v41  ;;  %v304_v54 = vmul.f32 %v296_v19, %v1663_v51 }
  0x6a   :  { %v305_v8 = vmul.f32 %v297_v36, %v1664_v55  ;;  %v306_v7 = vmul.f32 %v298_v38, %v1665_v56  ;;  %v307_v42 = vmul.f32 %v299_v45, %v1666_v0  ;;  %v308_v9 = vmul.f32 %v300_v16, %v1667_v28  ;;  %v1668_v56 = vld [vmem:[#allocation44_spill] sm:$0xff] }
  0x6b   :  { %v384_v29 = vadd.f32 %v273_v37, %v269_v48  ;;  %v391_v61 = vadd.f32 %v274_v60, %v270_v2  ;;  %v398_v15 = vadd.f32 %v275_v21, %v271_v59  ;;  %v405_v30 = vadd.f32 %v276_v26, %v272_v17 }
  0x6c   :  { %v448_v11 = vadd.f32 %v305_v8, %v301_v39  ;;  %v455_v22 = vadd.f32 %v306_v7, %v302_v1  ;;  %v462_v31 = vadd.f32 %v307_v42, %v303_v40  ;;  %v469_v63 = vadd.f32 %v308_v9, %v304_v54  ;;  %v1670_v9 = vld [vmem:[#allocation46_spill] sm:$0xff] }
  0x6d   :  { %v385_v49 = vrot.slane %v384_v29, 4  ;;  %v392_v32 = vrot.slane %v391_v61, 4  ;;  %v399_v12 = vrot.slane %v398_v15, 4  ;;  %v406_v10 = vrot.slane %v405_v30, 4 }
  0x6e   :  { %v449_v33 = vrot.slane %v448_v11, 4  ;;  %v456_v46 = vrot.slane %v455_v22, 4  ;;  %v463_v62 = vrot.slane %v462_v31, 4  ;;  %v470_v34 = vrot.slane %v469_v63, 4 }
  0x6f   :  { %v386_v52 = vadd.f32 %v385_v49, %v384_v29  ;;  %v393_v20 = vadd.f32 %v392_v32, %v391_v61  ;;  %v400_v35 = vadd.f32 %v399_v12, %v398_v15  ;;  %v407_v4 = vadd.f32 %v406_v10, %v405_v30  ;;  %v1671_v61 = vld [vmem:[#allocation47_spill] sm:$0xff]  ;;  %v1673_v30 = vld [vmem:[#allocation45_spill] sm:$0xff] }
  0x70   :  { %v450_v43 = vadd.f32 %v449_v33, %v448_v11  ;;  %v457_v3 = vadd.f32 %v456_v46, %v455_v22  ;;  %v464_v48 = vadd.f32 %v463_v62, %v462_v31  ;;  %v471_v2 = vadd.f32 %v470_v34, %v469_v63  ;;  %v1672_v15 = vld [vmem:[#allocation43_spill] sm:$0xff]  ;;  %v447_v34 = vld [vmem:[#allocation3] sm:$0xf] }
  0x71   :  { %v387_v59 = vrot.slane %v386_v52, 2  ;;  %v394_v17 = vrot.slane %v393_v20, 2  ;;  %v401_v37 = vrot.slane %v400_v35, 2  ;;  %v408_v60 = vrot.slane %v407_v4, 2  ;;  %v383_v46 = vld [vmem:[#allocation2] sm:$0xf] }
  0x72   :  { %v451_v21 = vrot.slane %v450_v43, 2  ;;  %v458_v26 = vrot.slane %v457_v3, 2  ;;  %v465_v53 = vrot.slane %v464_v48, 2  ;;  %v472_v47 = vrot.slane %v471_v2, 2 }
  0x73   :  { %v388_v44 = vadd.f32 %v387_v59, %v386_v52  ;;  %v395_v27 = vadd.f32 %v394_v17, %v393_v20  ;;  %v402_v14 = vadd.f32 %v401_v37, %v400_v35  ;;  %v409_v5 = vadd.f32 %v408_v60, %v407_v4  ;;  %v507_v20 = vld [vmem:[#allocation4] sm:$0xf] }
  0x74   :  { %v452_v13 = vadd.f32 %v451_v21, %v450_v43  ;;  %v459_v18 = vadd.f32 %v458_v26, %v457_v3  ;;  %v466_v25 = vadd.f32 %v465_v53, %v464_v48  ;;  %v473_v6 = vadd.f32 %v472_v47, %v471_v2  ;;  %v1676_v59 = vld [vmem:[#allocation37_spill] sm:$0xff] }
  0x75   :  { %v389_v57 = vrot.slane %v388_v44, 1  ;;  %v396_v19 = vrot.slane %v395_v27, 1  ;;  %v403_v36 = vrot.slane %v402_v14, 1  ;;  %v410_v38 = vrot.slane %v409_v5, 1 }
  0x76   :  { %v453_v58 = vrot.slane %v452_v13, 1  ;;  %v460_v45 = vrot.slane %v459_v18, 1  ;;  %v467_v50 = vrot.slane %v466_v25, 1  ;;  %v474_v16 = vrot.slane %v473_v6, 1 }
  0x77   :  { %v390_v23 = vadd.f32 %v389_v57, %v388_v44  ;;  %v397_v39 = vadd.f32 %v396_v19, %v395_v27  ;;  %v404_v24 = vadd.f32 %v403_v36, %v402_v14  ;;  %v411_v1 = vadd.f32 %v410_v38, %v409_v5 }
  0x78   :  { %v454_v41 = vadd.f32 %v453_v58, %v452_v13  ;;  %v461_v40 = vadd.f32 %v460_v45, %v459_v18  ;;  %v468_v51 = vadd.f32 %v467_v50, %v466_v25  ;;  %v475_v54 = vadd.f32 %v474_v16, %v473_v6 }
  0x79   :  { %v416_v55 = vcombine.low %v390_v23, %v397_v39  ;;  %v417_v8 = vcombine.low %v404_v24, %v411_v1  ;;  %v1669_v7 = vrot.slane %v1668_v56, 1  ;;  %v1674_v11 = vcombine.low %v1672_v15, %v1673_v30  ;;  %v1677_v30 = vld [vmem:[#allocation23_spill] sm:$0xff] }
  0x7a   :  { %v480_v42 = vcombine.low %v454_v41, %v461_v40  ;;  %v481_v28 = vcombine.low %v468_v51, %v475_v54  ;;  %v1459_v17 = vsub.s32 0, %v1676_v59  ;;  %v1462_v37 = vsub.s32 1, %v1676_v59 }
  0x7b   :  { %v535_v0 = vadd.f32 %v1669_v7, %v1668_v56  ;;  %v548_v22 = vrot.slane %v1674_v11, %v1671_v61  ;;  %v424_v31 = vrot.slane %v416_v55, %v1671_v61  ;;  %v431_v63 = vrot.slane %v417_v8, %v1671_v61 }
  0x7c   :  { %v488_v49 = vrot.slane %v480_v42, %v1671_v61  ;;  %v495_v32 = vrot.slane %v481_v28, %v1671_v61  ;;  %v1465_v60 = vsub.s32 2, %v1676_v59  ;;  %v1468_v21 = vsub.s32 3, %v1676_v59 }
  0x7d   :  { %v541_v29 = vcombine.low %v1670_v9, %v535_v0  ;;  %v432_v10 = vcombine.low %v424_v31, %v431_v63  ;;  %v1679_v63 = vld [vmem:[#allocation25_spill] sm:$0xff] }
  0x7e   :  { %v496_v33 = vcombine.low %v488_v49, %v495_v32  ;;  %v1680_v32 = vld [vmem:[#allocation26_spill] sm:$0xff] }
  0x7f   :  { %v555_v12 = vrot.slane %v541_v29, %v1671_v61  ;;  %v439_v52 = vrot.slane %v432_v10, %v1671_v61  ;;  %v1681_v10 = vld [vmem:[#allocation27_spill] sm:$0xff] }
  0x80   :  { %v503_v35 = vrot.slane %v496_v33, %v1671_v61 }
  0x81   :  { %v556_v62 = vcombine.low %v548_v22, %v555_v12  ;;  %v441_v43 = vadd.f32 %v439_v52, %v383_v46  ;;  %v1678_v22 = vld [vmem:[#allocation24_spill] sm:$0xff] }
  0x82   :  { %v505_v3 = vadd.f32 %v503_v35, %v447_v34  ;;  %v1682_v46 = vld [vmem:[#allocation28_spill] sm:$0xff]  ;;  %v1683_v34 = vld [vmem:[#allocation29_spill] sm:$0xff] }
  0x83   :  { %v563_v4 = vrot.slane %v556_v62, %v1671_v61  ;;  %446 = vst.msk [vmem:[#allocation2] sm:$0xf] %vm1253_vm8, %v441_v43 }
  0x84   :  { %506 = vst.msk [vmem:[#allocation3] sm:$0xf] %vm1253_vm8, %v505_v3 }
  0x85   :  { %v565_v48 = vadd.f32 %v563_v4, %v507_v20  ;;  %v1684_v20 = vld [vmem:[#allocation30_spill] sm:$0xff] }
  0x87   :  { %566 = vst.msk [vmem:[#allocation4] sm:$0xf] %vm1253_vm8, %v565_v48 }
  0x8a   :  { %v630_v26 = vld [vmem:[#allocation2] sm:$0xf] }
  0x8b   :  { %v673_v53 = vld [vmem:[#allocation3] sm:$0xf]  ;;  %v635_v47 = vrot.slane %v630_v26, %v1459_v17  ;;  %v639_v44 = vrot.slane %v630_v26, %v1462_v37  ;;  %v643_v18 = vrot.slane %v630_v26, %v1465_v60  ;;  %v647_v45 = vrot.slane %v630_v26, %v1468_v21 }
  0x8c   :  { %v678_v14 = vrot.slane %v673_v53, %v1459_v17  ;;  %v682_v5 = vrot.slane %v673_v53, %v1462_v37  ;;  %v686_v13 = vrot.slane %v673_v53, %v1465_v60  ;;  %v690_v36 = vrot.slane %v673_v53, %v1468_v21 }
  0x8d   :  { %v653_v41 = vsel %vm652_vm9, %v635_v47, 0.0  ;;  %v654_v40 = vsel %vm652_vm9, %v639_v44, 0.0  ;;  %v656_v55 = vsel %vm652_vm9, %v643_v18, 0.0  ;;  %v658_v7 = vsel %vm652_vm9, %v647_v45, 0.0 }
  0x8e   :  { %v714_v27 = vld [vmem:[#allocation4] sm:$0xf]  ;;  %v695_v38 = vsel %vm652_vm9, %v678_v14, 0.0  ;;  %v696_v58 = vsel %vm652_vm9, %v682_v5, 0.0  ;;  %v698_v39 = vsel %vm652_vm9, %v686_v13, 0.0  ;;  %v655_v54 = vadd.f32 %v654_v40, %v653_v41 }
  0x8f   :  { %v719_v25 = vrot.slane %v714_v27, %v1459_v17  ;;  %v723_v6 = vrot.slane %v714_v27, %v1462_v37  ;;  %v727_v57 = vrot.slane %v714_v27, %v1465_v60  ;;  %v731_v19 = vrot.slane %v714_v27, %v1468_v21  ;;  %v1687_v41 = vld [vmem:[#allocation36_spill] sm:$0xff] }
  0x90   :  { %v697_v1 = vadd.f32 %v696_v58, %v695_v38  ;;  %v700_v0 = vsel %vm652_vm9, %v690_v36, 0.0  ;;  %v657_v42 = vadd.f32 %v656_v55, %v655_v54  ;;  %v1689_v55 = vld [vmem:[#allocation39_spill] sm:$0xff] }
  0x91   :  { %v736_v50 = vsel %vm652_vm9, %v719_v25, 0.0  ;;  %v737_v16 = vsel %vm652_vm9, %v723_v6, 0.0  ;;  %v739_v23 = vsel %vm652_vm9, %v727_v57, 0.0  ;;  %v741_v51 = vsel %vm652_vm9, %v731_v19, 0.0 }
  0x92   :  { %v738_v24 = vadd.f32 %v737_v16, %v736_v50  ;;  %v699_v56 = vadd.f32 %v698_v39, %v697_v1  ;;  %v659_v9 = vadd.f32 %v658_v7, %v657_v42 }
  0x94   :  { %v740_v8 = vadd.f32 %v739_v23, %v738_v24  ;;  %v701_v29 = vadd.f32 %v700_v0, %v699_v56  ;;  %660 = vadd.xlane.f32.xlu0 %v659_v9  ;;  %v1685_v23 = vld [vmem:[#allocation32_spill] sm:$0xff]  ;;  %v1686_v24 = vld [vmem:[#allocation35_spill] sm:$0xff]  ;;  %v1691_v0 = vld [vmem:[#allocation41_spill] sm:$0xff] }
  0x95   :  { %v1690_v56 = vld [vmem:[#allocation40_spill] sm:$0xff] }
  0x96   :  { %v742_v28 = vadd.f32 %v741_v51, %v740_v8  ;;  %v1688_v51 = vld [vmem:[#allocation38_spill] sm:$0xff] }
  0x98   :  { %743 = vadd.xlane.f32.xlu1 %v742_v28  ;;  %v1692_v28 = vld [vmem:[#allocation42_spill] sm:$0xff] }
  0x9c   :  { %702 = vadd.xlane.f32.xlu1 %v701_v29 }
  0xac   :  { %v317_v15 = vpop.permute.xlu0 %316 }
  0xad   :  { %v319_v11 = vmul.f32 %v317_v15, %v1677_v30  ;;  %v320_v31 = vmul.f32 %v317_v15, %v1678_v22  ;;  %v321_v49 = vmul.f32 %v317_v15, %v1679_v63  ;;  %v322_v12 = vmul.f32 %v317_v15, %v1680_v32 }
  0xae   :  { %v323_v33 = vmul.f32 %v317_v15, %v1681_v10  ;;  %v324_v62 = vmul.f32 %v317_v15, %v1682_v46  ;;  %v325_v52 = vmul.f32 %v317_v15, %v1683_v34  ;;  %v326_v35 = vmul.f32 %v317_v15, %v1684_v20 }
  0xaf   :  { %vm327_vm10 = vcmp.gt.f32.partialorder %v319_v11, 0.0  ;;  %vm328_vm11 = vcmp.gt.f32.partialorder %v320_v31, 0.0  ;;  %vm329_vm12 = vcmp.gt.f32.partialorder %v321_v49, 0.0  ;;  %vm330_vm13 = vcmp.gt.f32.partialorder %v322_v12, 0.0 }
  0xb0   :  { %vm331_vm14 = vcmp.gt.f32.partialorder %v323_v33, 0.0  ;;  %vm332_vm15 = vcmp.gt.f32.partialorder %v324_v62, 0.0  ;;  %vm333_vm0 = vcmp.gt.f32.partialorder %v325_v52, 0.0  ;;  %vm334_vm1 = vcmp.gt.f32.partialorder %v326_v35, 0.0 }
  0xb1   :  { %v335_v4 = vmul.f32 1000.0, %v319_v11  ;;  %v336_v43 = vmul.f32 1000.0, %v320_v31  ;;  %v337_v3 = vmul.f32 1000.0, %v321_v49  ;;  %v338_v48 = vmul.f32 1000.0, %v322_v12 }
  0xb2   :  { %v339_v59 = vmul.f32 1000.0, %v323_v33  ;;  %v340_v26 = vmul.f32 1000.0, %v324_v62  ;;  %v341_v53 = vmul.f32 1000.0, %v325_v52  ;;  %v342_v47 = vmul.f32 1000.0, %v326_v35 }
  0xb3   :  { %v343_v44 = vadd.f32 1.0, %v335_v4  ;;  %v344_v27 = vadd.f32 1.0, %v336_v43  ;;  %v345_v14 = vadd.f32 1.0, %v337_v3  ;;  %v346_v5 = vadd.f32 1.0, %v338_v48 }
  0xb4   :  { %v347_v13 = vadd.f32 1.0, %v339_v59  ;;  %v348_v18 = vadd.f32 1.0, %v340_v26  ;;  %v349_v25 = vadd.f32 1.0, %v341_v53  ;;  %v350_v6 = vadd.f32 1.0, %v342_v47 }
  0xb5   :  { %v351_v57 = vsel %vm327_vm10, %v343_v44, 1.0  ;;  %v352_v19 = vsel %vm328_vm11, %v344_v27, 1.0  ;;  %v353_v36 = vsel %vm329_vm12, %v345_v14, 1.0  ;;  %v354_v38 = vsel %vm330_vm13, %v346_v5, 1.0 }
  0xb6   :  { %v355_v58 = vsel %vm331_vm14, %v347_v13, 1.0  ;;  %v356_v45 = vsel %vm332_vm15, %v348_v18, 1.0  ;;  %v357_v50 = vsel %vm333_vm0, %v349_v25, 1.0  ;;  %v358_v16 = vsel %vm334_vm1, %v350_v6, 1.0 }
  0xb7   :  { %v359_v39 = vsub.f32 %v319_v11, %v1685_v23  ;;  %v360_v1 = vsub.f32 %v320_v31, %v1686_v24  ;;  %v361_v40 = vsub.f32 %v321_v49, %v1687_v41  ;;  %v362_v54 = vsub.f32 %v322_v12, %v1688_v51 }
  0xb8   :  { %v363_v8 = vsub.f32 %v323_v33, %v1689_v55  ;;  %v364_v7 = vsub.f32 %v324_v62, %v1690_v56  ;;  %v365_v42 = vsub.f32 %v325_v52, %v1691_v0  ;;  %v366_v9 = vsub.f32 %v326_v35, %v1692_v28 }
  0xb9   :  { %v367_v29 = vmul.f32 %v359_v39, %v351_v57  ;;  %v368_v15 = vmul.f32 %v360_v1, %v352_v19  ;;  %v369_v30 = vmul.f32 %v361_v40, %v353_v36  ;;  %v370_v22 = vmul.f32 %v362_v54, %v354_v38 }
  0xba   :  { %v371_v63 = vmul.f32 %v363_v8, %v355_v58  ;;  %v372_v11 = vmul.f32 %v364_v7, %v356_v45  ;;  %v373_v32 = vmul.f32 %v365_v42, %v357_v50  ;;  %v374_v31 = vmul.f32 %v366_v9, %v358_v16 }
  0xbb   :  { %v375_v10 = vmul.f32 %v367_v29, %v359_v39  ;;  %v376_v49 = vmul.f32 %v368_v15, %v360_v1  ;;  %v377_v46 = vmul.f32 %v369_v30, %v361_v40  ;;  %v378_v12 = vmul.f32 %v370_v22, %v362_v54  ;;  %v567_v54 = vld [vmem:[#allocation5] sm:$0xf] }
  0xbc   :  { %v379_v34 = vmul.f32 %v371_v63, %v363_v8  ;;  %v380_v33 = vmul.f32 %v372_v11, %v364_v7  ;;  %v381_v20 = vmul.f32 %v373_v32, %v365_v42  ;;  %v382_v62 = vmul.f32 %v374_v31, %v366_v9 }
  0xbe   :  { %v568_v4 = vadd.f32 %v379_v34, %v375_v10  ;;  %v575_v52 = vadd.f32 %v380_v33, %v376_v49  ;;  %v582_v43 = vadd.f32 %v381_v20, %v377_v46  ;;  %v589_v35 = vadd.f32 %v382_v62, %v378_v12 }
  0xc0   :  { %v569_v3 = vrot.slane %v568_v4, 4  ;;  %v576_v48 = vrot.slane %v575_v52, 4  ;;  %v583_v59 = vrot.slane %v582_v43, 4  ;;  %v590_v26 = vrot.slane %v589_v35, 4 }
  0xc2   :  { %v570_v53 = vadd.f32 %v569_v3, %v568_v4  ;;  %v577_v47 = vadd.f32 %v576_v48, %v575_v52  ;;  %v584_v44 = vadd.f32 %v583_v59, %v582_v43  ;;  %v591_v27 = vadd.f32 %v590_v26, %v589_v35 }
  0xc4   :  { %v571_v14 = vrot.slane %v570_v53, 2  ;;  %v578_v5 = vrot.slane %v577_v47, 2  ;;  %v585_v13 = vrot.slane %v584_v44, 2  ;;  %v592_v18 = vrot.slane %v591_v27, 2 }
  0xc6   :  { %v572_v25 = vadd.f32 %v571_v14, %v570_v53  ;;  %v579_v6 = vadd.f32 %v578_v5, %v577_v47  ;;  %v586_v57 = vadd.f32 %v585_v13, %v584_v44  ;;  %v593_v19 = vadd.f32 %v592_v18, %v591_v27 }
  0xc8   :  { %v573_v36 = vrot.slane %v572_v25, 1  ;;  %v580_v38 = vrot.slane %v579_v6, 1  ;;  %v587_v58 = vrot.slane %v586_v57, 1  ;;  %v594_v45 = vrot.slane %v593_v19, 1 }
  0xca   :  { %v574_v50 = vadd.f32 %v573_v36, %v572_v25  ;;  %v581_v16 = vadd.f32 %v580_v38, %v579_v6  ;;  %v588_v23 = vadd.f32 %v587_v58, %v586_v57  ;;  %v595_v39 = vadd.f32 %v594_v45, %v593_v19 }
  0xcc   :  { %v600_v24 = vcombine.low %v574_v50, %v581_v16  ;;  %v601_v1 = vcombine.low %v588_v23, %v595_v39 }
  0xce   :  { %v608_v41 = vrot.slane %v600_v24, %v1671_v61  ;;  %v615_v40 = vrot.slane %v601_v1, %v1671_v61 }
  0xd0   :  { %v616_v51 = vcombine.low %v608_v41, %v615_v40 }
  0xd2   :  { %v623_v55 = vrot.slane %v616_v51, %v1671_v61 }
  0xd4   :  { %v625_v8 = vadd.f32 %v623_v55, %v567_v54 }
  0xd6   :  { %626 = vst.msk [vmem:[#allocation5] sm:$0xf] %vm1253_vm8, %v625_v8 }
  0xdd   :  { %v755_v56 = vld [vmem:[#allocation5] sm:$0xf] }
  0xde   :  { %v760_v7 = vrot.slane %v755_v56, %v1459_v17  ;;  %v764_v0 = vrot.slane %v755_v56, %v1462_v37  ;;  %v768_v42 = vrot.slane %v755_v56, %v1465_v60  ;;  %v772_v28 = vrot.slane %v755_v56, %v1468_v21 }
  0xe0   :  { %v777_v9 = vsel %vm652_vm9, %v760_v7, 0.0  ;;  %v778_v29 = vsel %vm652_vm9, %v764_v0, 0.0  ;;  %v780_v61 = vsel %vm652_vm9, %v768_v42, 0.0  ;;  %v782_v2 = vsel %vm652_vm9, %v772_v28, 0.0 }
  0xe1   :  { %v779_v15 = vadd.f32 %v778_v29, %v777_v9 }
  0xe3   :  { %v781_v30 = vadd.f32 %v780_v61, %v779_v15 }
  0xe5   :  { %v783_v22 = vadd.f32 %v782_v2, %v781_v30 }
  0xe7   :  { %784 = vadd.xlane.f32.xlu1 %v783_v22 }
 0x121   :  { %v661_v11 = vpop.xlane.xlu0 %660 }
 0x122   :  { %v662_v37 = vrot.slane %v661_v11, 4 }
 0x124   :  { %v663_v31 = vadd.f32 %v662_v37, %v661_v11 }
 0x125   :  { %v744_v63 = vpop.xlane.xlu1 %743 }
 0x126   :  { %v745_v17 = vrot.slane %v744_v63, 4  ;;  %v664_v49 = vrot.slane %v663_v31, 2 }
 0x128   :  { %v746_v32 = vadd.f32 %v745_v17, %v744_v63  ;;  %v665_v34 = vadd.f32 %v664_v49, %v663_v31 }
 0x129   :  { %v703_v60 = vpop.xlane.xlu1 %702 }
 0x12a   :  { %v747_v21 = vrot.slane %v746_v32, 2  ;;  %v704_v10 = vrot.slane %v703_v60, 4  ;;  %v666_v20 = vrot.slane %v665_v34, 1 }
 0x12c   :  { %v705_v46 = vadd.f32 %v704_v10, %v703_v60  ;;  %v748_v12 = vadd.f32 %v747_v21, %v746_v32  ;;  %v667_v52 = vadd.f32 %v666_v20, %v665_v34 }
 0x12e   :  { %v706_v33 = vrot.slane %v705_v46, 2  ;;  %v749_v62 = vrot.slane %v748_v12, 1  ;;  %870 = vpush %v667_v52 }
 0x130   :  { %v707_v4 = vadd.f32 %v706_v33, %v705_v46  ;;  %v750_v35 = vadd.f32 %v749_v62, %v748_v12 }
 0x132   :  { %v708_v43 = vrot.slane %v707_v4, 1 }
 0x134   :  { %v709_v3 = vadd.f32 %v708_v43, %v707_v4 }
 0x136   :  { %872 = vpush %v709_v3 }
 0x137   :  { %874 = vpush %v750_v35 }
 0x15f   :  { %s871_s24 = spop %870 }
 0x160   :  { %v669_v48 = vstv %s871_s24 }
 0x161   :  { %672 = vst.msk [vmem:[#allocation12] sm:$0x1] %vm671_vm2, %v669_v48 }
 0x167   :  { %s873_s29 = spop %872 }
 0x168   :  { %v711_v59 = vstv %s873_s29  ;;  %s875_s30 = spop %874 }
 0x169   :  { %v752_v26 = vstv %s875_s30  ;;  %713 = vst.msk [vmem:[#allocation13] sm:$0x1] %vm671_vm2, %v711_v59 }
 0x16a   :  { %993 = shalt.err (!%p990_p6)
}
 0x16b   :  { %s994_s10 = scalar_lea.hbm %s1602_s3, 16 }
 0x16c   :  { %p995_p7 = scmp.ne.s32.totalorder %s1602_s3, %s994_s10  ;;  %p998_p8 = scmp.lt.u32.totalorder %s994_s10, %s1602_s3 }
 0x16e   :  { %p1000_p9 = pnand %p998_p8, %p995_p7 }
 0x170   :  { %1003 = shalt.err (!%p1000_p9)
}
 0x171   :  { %805 = dma.vmem_to_hbm [thread:$0]  %s803_s23, 16, %s1602_s3, [#allocation9]   ;;  %754 = vst.msk [vmem:[#allocation15] sm:$0x1] %vm671_vm2, %v752_v26 }
 0x172   :  { %s1004_s17 = scalar_lea.vmem %s1532_s26, 16  ;;  %s1008_s18 = scalar_lea.vmem %s1532_s26, 32 }
 0x173   :  { %p1005_p10 = scmp.ne.s32.totalorder %s1532_s26, %s1004_s17  ;;  %p1009_p11 = scmp.lt.s32.totalorder %s1532_s26, %s1532_s26 }
 0x174   :  { %p1010_p12 = scmp.lt.s32.totalorder %s1008_s18, %s1004_s17 }
 0x176   :  { %p1011_p13 = por %p1010_p12, %p1009_p11 }
 0x178   :  { %p1012_p0 = pnand %p1011_p13, %p1005_p10 }
 0x17a   :  { %1015 = shalt.err (!%p1012_p0)
}
 0x17b   :  { %s1016_s21 = scalar_lea.hbm %s1603_s4, 16 }
 0x17c   :  { %p1017_p1 = scmp.ne.s32.totalorder %s1603_s4, %s1016_s21  ;;  %p1020_p2 = scmp.lt.u32.totalorder %s1016_s21, %s1603_s4 }
 0x17e   :  { %p1022_p3 = pnand %p1020_p2, %p1017_p1 }
 0x180   :  { %1025 = shalt.err (!%p1022_p3)
}
 0x181   :  { %815 = dma.vmem_to_hbm [thread:$0]  %s1532_s26, 16, %s1603_s4, [#allocation14]  }
 0x182   :  { %s1026_s25 = scalar_lea.vmem %s1534_s28, 16  ;;  %s1030_s27 = scalar_lea.vmem %s1534_s28, 32 }
 0x183   :  { %p1027_p4 = scmp.ne.s32.totalorder %s1534_s28, %s1026_s25  ;;  %p1031_p5 = scmp.lt.s32.totalorder %s1534_s28, %s1534_s28 }
 0x184   :  { %p1032_p6 = scmp.lt.s32.totalorder %s1030_s27, %s1026_s25 }
 0x186   :  { %p1033_p7 = por %p1032_p6, %p1031_p5 }
 0x188   :  { %p1034_p8 = pnand %p1033_p7, %p1027_p4 }
 0x18a   :  { %1037 = shalt.err (!%p1034_p8)
}
 0x18b   :  { %s1038_s7 = scalar_lea.hbm %s1604_s5, 16 }
 0x18c   :  { %p1039_p9 = scmp.ne.s32.totalorder %s1604_s5, %s1038_s7  ;;  %p1042_p10 = scmp.lt.u32.totalorder %s1038_s7, %s1604_s5 }
 0x18e   :  { %p1044_p11 = pnand %p1042_p10, %p1039_p9 }
 0x190   :  { %1047 = shalt.err (!%p1044_p11)
}
 0x191   :  { %825 = dma.vmem_to_hbm [thread:$0]  %s1534_s28, 16, %s1604_s5, [#allocation14]   ;;  %v785_v53 = vpop.xlane.xlu1 %784 }
 0x192   :  { %v786_v47 = vrot.slane %v785_v53, 4  ;;  %s1090_s11 = smov [#allocation16]  }
 0x193   :  { %s832_s12 = sshll.u32 %s1090_s11, 4  ;;  %s833_s12 = int_to_ptr.vmem [resolvable:$true] %s832_s12 }
 0x194   :  { %v787_v44 = vadd.f32 %v786_v47, %v785_v53  ;;  %s1048_s14 = scalar_lea.vmem %s833_s12, 16  ;;  %s1052_s15 = scalar_lea.vmem %s833_s12, 32 }
 0x195   :  { %p1049_p12 = scmp.ne.s32.totalorder %s833_s12, %s1048_s14  ;;  %p1053_p13 = scmp.lt.s32.totalorder %s833_s12, %s833_s12 }
 0x196   :  { %v788_v27 = vrot.slane %v787_v44, 2  ;;  %p1054_p0 = scmp.lt.s32.totalorder %s1052_s15, %s1048_s14 }
 0x198   :  { %v789_v14 = vadd.f32 %v788_v27, %v787_v44  ;;  %p1055_p1 = por %p1054_p0, %p1053_p13 }
 0x19a   :  { %v790_v5 = vrot.slane %v789_v14, 1  ;;  %p1056_p2 = pnand %p1055_p1, %p1049_p12 }
 0x19c   :  { %v791_v13 = vadd.f32 %v790_v5, %v789_v14 }
 0x19e   :  { %876 = vpush %v791_v13 }
 0x1cf   :  { %s877_s13 = spop %876 }
 0x1d0   :  { %v793_v18 = vstv %s877_s13 }
 0x1d1   :  { %795 = vst.msk [vmem:[#allocation16] sm:$0x1] %vm671_vm2, %v793_v18 }
 0x1d2   :  { %1059 = shalt.err (!%p1056_p2)
}
 0x1d3   :  { %s1060_s16 = scalar_lea.hbm %s1605_s6, 16 }
 0x1d4   :  { %p1061_p3 = scmp.ne.s32.totalorder %s1605_s6, %s1060_s16  ;;  %p1064_p4 = scmp.lt.u32.totalorder %s1060_s16, %s1605_s6 }
 0x1d6   :  { %p1066_p5 = pnand %p1064_p4, %p1061_p3 }
 0x1d8   :  { %1069 = shalt.err (!%p1066_p5)
}
 0x1d9   :  { %835 = dma.vmem_to_hbm [thread:$0]  %s833_s12, 16, %s1605_s6, [#allocation17]  }
 0x1da   :  { %1074 = dma.done.wait [#allocation9], 16  }
 0x1db   :  { %1075 = vsyncadd [#allocation9], 4294967280 }
 0x1dc   :  { %1076 = dma.done.wait [#allocation14], 32  }
 0x1dd   :  { %1077 = vsyncadd [#allocation14], 4294967264 }
 0x1de   :  { %1078 = dma.done.wait [#allocation17], 16  }
 0x1df   :  { %1079 = vsyncadd [#allocation17], 4294967280 }
 0x1e0   :  { %848 = vsyncpa [#allocation8], 1 }
 0x1e1   :  { %849 = vsyncpa [#allocation11], 1 }
 0x1e2   :  { %850 = vsyncpa [#allocation9], 1 }
 0x1e3   :  { %851 = vsyncpa [#allocation14], 1 }
 0x1e4   :  { %852 = vsyncpa [#allocation17], 1 }

</bundles_post_ra>
